<compile_context>
chip_gen: v7x
topology: tpu7x:2x2x1
jax: 0.10.0
libtpu: 0.0.40
codegen_flags: <defaults>
</compile_context>

<pallas_src>
import numpy as np
import jax
import jax.numpy as jnp
from jax.experimental import pallas as pl
from jax.experimental.pallas import tpu as pltpu

KERNEL_SIZE = 11   # torchmetrics SSIM defaults
SIGMA = 1.5
K1, K2 = 0.01, 0.03


def _gaussian_1d(kernel_size=KERNEL_SIZE, sigma=SIGMA):
    # Same construction as torchmetrics' _gaussian()
    dist = np.arange((1 - kernel_size) / 2.0, (1 + kernel_size) / 2.0, 1.0,
                     dtype=np.float64)
    g = np.exp(-((dist / sigma) ** 2) / 2.0)
    return g / g.sum()


def _round_up(x, m):
    return ((x + m - 1) // m) * m


def _filter_matrices(H, W):
    """Banded matrices for the separable 'valid' Gaussian convolution.

    gfilt(m) == Gv @ (m @ Gh), with Gv (Hv, H) and Gh (W, Wvp), where
    Wvp = round_up(Wv, 128) and the padding columns are zero (so padded output
    lanes are exactly 0 and can be masked out of the SSIM sum).
    torchmetrics reflect-pads then crops the border, which is equivalent to a
    valid convolution on the unpadded image, averaged over Hv x Wv.
    """
    g = _gaussian_1d()
    Hv = H - KERNEL_SIZE + 1
    Wv = W - KERNEL_SIZE + 1
    Wvp = _round_up(Wv, 128)
    Gv = np.zeros((Hv, H), dtype=np.float32)
    for i in range(Hv):
        Gv[i, i:i + KERNEL_SIZE] = g
    Gh = np.zeros((W, Wvp), dtype=np.float32)
    for w in range(Wv):
        Gh[w:w + KERNEL_SIZE, w] = g
    return Gv, Gh, Hv, Wv, Wvp


def _build_kernel(BB, C, H, W, Hv, Wv, Wvp, lo, hi):
    data_range = hi - lo
    c1 = (K1 * data_range) ** 2
    c2 = (K2 * data_range) ** 2
    P = BB * C            # image planes processed per grid step

    def kernel(x_ref, y_ref, gv_ref, gh_ref, mse_ref, ssim_ref):
        x = x_ref[...].astype(jnp.float32)    # (P*H, W): BB batch elems x C planes
        y = y_ref[...].astype(jnp.float32)
        gv = gv_ref[...]                      # (Hv, H)
        gh = gh_ref[...]                      # (W, Wvp), zero-padded columns

        # ---- MSE partial sum (unclamped, matches torch.nn.MSELoss) ----
        d = x - y
        mse_part = jnp.sum(d * d)

        # ---- SSIM (torchmetrics clamps inputs when data_range is a tuple) ----
        xc = jnp.clip(x, lo, hi)
        yc = jnp.clip(y, lo, hi)
        maps = (xc, yc, xc * xc, yc * yc, xc * yc)

        # Hoisted broadcast LHS for the batched vertical pass (not rebuilt per map).
        gvb = jnp.broadcast_to(gv, (P, Hv, H))

        filt = []
        for m in maps:
            # Horizontal pass: one big matmul (M = P*H rows, lane-dense N = Wvp),
            # reusing the same Gh RHS for all 5 maps (no concat copy).
            th = jnp.dot(m, gh, preferred_element_type=jnp.float32)      # (P*H, Wvp)
            # Vertical pass: one batched matmul over all P planes at once.
            tv = jnp.einsum('pvh,phw->pvw', gvb, th.reshape(P, H, Wvp),
                            preferred_element_type=jnp.float32)          # (P, Hv, Wvp)
            filt.append(tv)
        mu_x, mu_y, e_xx, e_yy, e_xy = filt

        # SSIM formula fully vectorized over (plane, Hv, Wvp); single reduction.
        mu_x2 = mu_x * mu_x
        mu_y2 = mu_y * mu_y
        mu_xy = mu_x * mu_y
        s_xx = e_xx - mu_x2
        s_yy = e_yy - mu_y2
        s_xy = e_xy - mu_xy
        num = (2.0 * mu_xy + c1) * (2.0 * s_xy + c2)
        den = (mu_x2 + mu_y2 + c1) * (s_xx + s_yy + c2)
        ssim_map = num * pl.reciprocal(den, approx=True)
        if Wvp != Wv:   # mask the zero-padded output lanes out of the sum
            lane = jax.lax.broadcasted_iota(jnp.int32, ssim_map.shape, 2)
            ssim_map = jnp.where(lane < Wv, ssim_map, 0.0)
        ssim_part = jnp.sum(ssim_map)

        # Broadcast scalar partials to the whole (8,128) block -> full, unmasked
        # lane-dense vector stores.
        mse_ref[...] = mse_part + jnp.zeros(mse_ref.shape, jnp.float32)
        ssim_ref[...] = ssim_part + jnp.zeros(ssim_ref.shape, jnp.float32)

    return kernel


def _physical_vmem_bytes():
    try:
        info = pltpu.get_tpu_info()
        v = getattr(info, "vmem_capacity_bytes", None)
        if v:
            return int(v)
    except Exception:
        pass
    return 64 * 1024 * 1024   # conservative default (v7x per-TensorCore VMEM)


def _working_set_bytes(bb, C, H, W, Hv, Wvp):
    """Rough per-grid-step VMEM working set (f32 words -> bytes)."""
    P = bb * C
    words = (4 * P * H * W          # x, y (double-buffered by the pipeline)
             + 7 * P * H * W        # clipped inputs + the 5 product maps (peak live)
             + 5 * P * H * Wvp      # horizontally filtered maps
             + 12 * P * Hv * Wvp    # vertically filtered maps + SSIM temporaries
             + P * Hv * H           # broadcast Gv for the batched vertical pass
             + W * Wvp + Hv * H)    # filter matrices
    return 4 * words


def _pick_batch_block(B, C, H, W, Hv, Wvp, budget_bytes):
    """Largest divisor of B whose working set fits and whose row block is valid."""
    best = None
    for bb in range(1, B + 1):
        if B % bb:
            continue
        if bb != B and (bb * C * H) % 8 != 0:   # (8,128) second-minor constraint
            continue
        if _working_set_bytes(bb, C, H, W, Hv, Wvp) <= budget_bytes:
            best = bb
    if best is None:
        # TODO(synk): H-band tiling with a KERNEL_SIZE-1 row halo for images whose
        # single-element working set exceeds VMEM; fall back to the smallest
        # legal block for now.
        best = 1 if (C * H) % 8 == 0 else B
    return best


def mse_ssim_loss(output, target, value_range=(0.0, 1.0), alpha=1.0, beta=1.0):
    """alpha * MSE(output, target) + beta * (1 - SSIM(output, target))."""
    B, C, H, W = output.shape
    if H < KERNEL_SIZE or W < KERNEL_SIZE:
        raise ValueError(
            f"SSIM with a {KERNEL_SIZE}x{KERNEL_SIZE} Gaussian kernel requires "
            f"H, W >= {KERNEL_SIZE}; got H={H}, W={W}.")
    lo, hi = float(value_range[0]), float(value_range[1])

    Gv, Gh, Hv, Wv, Wvp = _filter_matrices(H, W)

    # VMEM budget: leave headroom below physical capacity (never request it all).
    physical = _physical_vmem_bytes()
    headroom = 12 * 1024 * 1024 if physical <= 64 * 1024 * 1024 else 16 * 1024 * 1024
    budget = physical - headroom

    BB = _pick_batch_block(B, C, H, W, Hv, Wvp, int(0.85 * budget))
    nsteps = B // BB
    est = _working_set_bytes(BB, C, H, W, Hv, Wvp)
    vmem_limit = int(min(max(int(1.25 * est), 32 * 1024 * 1024), budget))

    kernel = _build_kernel(BB, C, H, W, Hv, Wv, Wvp, lo, hi)

    rows = BB * C * H
    xr = output.reshape(B * C * H, W)       # row order (b, c, h); lanes = w
    yr = target.reshape(B * C * H, W)
    gv = jnp.asarray(Gv)
    gh = jnp.asarray(Gh)

    mse_parts, ssim_parts = pl.pallas_call(
        kernel,
        out_shape=(jax.ShapeDtypeStruct((nsteps, 8, 128), jnp.float32),
                   jax.ShapeDtypeStruct((nsteps, 8, 128), jnp.float32)),
        grid_spec=pltpu.PrefetchScalarGridSpec(
            num_scalar_prefetch=0,
            grid=(nsteps,),
            in_specs=[
                pl.BlockSpec((rows, W), lambda b: (b, 0)),
                pl.BlockSpec((rows, W), lambda b: (b, 0)),
                pl.BlockSpec((Hv, H), lambda b: (0, 0)),
                pl.BlockSpec((W, Wvp), lambda b: (0, 0)),
            ],
            out_specs=(
                pl.BlockSpec((None, 8, 128), lambda b: (b, 0, 0)),
                pl.BlockSpec((None, 8, 128), lambda b: (b, 0, 0)),
            ),
        ),
        compiler_params=pltpu.CompilerParams(
            dimension_semantics=("parallel",),
            vmem_limit_bytes=vmem_limit),
    )(xr, yr, gv, gh)

    mse = jnp.sum(mse_parts[:, 0, 0]) / float(B * C * H * W)
    ssim = jnp.sum(ssim_parts[:, 0, 0]) / float(B * C * Hv * Wv)
    return alpha * mse + beta * (1.0 - ssim)


if __name__ == "__main__":
    key = jax.random.PRNGKey(0)
    key1, key2 = jax.random.split(key)
    B, C, H, W = 2, 4, 16, 16
    output = jax.random.uniform(key1, (B, C, H, W), dtype=jnp.float32)
    target = jax.random.uniform(key2, (B, C, H, W), dtype=jnp.float32)

    loss = mse_ssim_loss(output, target, value_range=(0.0, 1.0),
                         alpha=1.0, beta=1.0)
    jax.block_until_ready(loss)
    print("KERNEL_OK")
</pallas_src>

<mosaic_0001>
module attributes {stable_mosaic.version = 11 : i64} {
  func.func @kernel(%arg0: i32, %arg1: memref<128x16xf32, #tpu.memory_space<vmem>>, %arg2: memref<128x16xf32, #tpu.memory_space<vmem>>, %arg3: memref<6x16xf32, #tpu.memory_space<vmem>>, %arg4: memref<16x128xf32, #tpu.memory_space<vmem>>, %arg5: memref<1x8x128xf32, #tpu.memory_space<vmem>>, %arg6: memref<1x8x128xf32, #tpu.memory_space<vmem>>) attributes {dimension_semantics = [#tpu.dimension_semantics<parallel>], iteration_bounds = array<i64: 1>, scalar_prefetch = 0 : i64, scratch_operands = 0 : i64, tpu.core_type = #tpu.core_type<tc>, window_params = [{transform_indices = @transform_0, window_bounds = array<i64: 128, 16>}, {transform_indices = @transform_1, window_bounds = array<i64: 128, 16>}, {pipeline_mode = #tpu.pipeline_mode<synchronous>, transform_indices = @transform_2, window_bounds = array<i64: 6, 16>}, {pipeline_mode = #tpu.pipeline_mode<synchronous>, transform_indices = @transform_3, window_bounds = array<i64: 16, 128>}, {transform_indices = @transform_4, window_bounds = array<i64: 1, 8, 128>}, {transform_indices = @transform_5, window_bounds = array<i64: 1, 8, 128>}]} {
    %c0 = arith.constant 0 : index
    %c0_0 = arith.constant 0 : index
    %0 = vector.load %arg1[%c0, %c0_0] : memref<128x16xf32, #tpu.memory_space<vmem>>, vector<128x16xf32>
    %c0_1 = arith.constant 0 : index
    %c0_2 = arith.constant 0 : index
    %1 = vector.load %arg2[%c0_1, %c0_2] : memref<128x16xf32, #tpu.memory_space<vmem>>, vector<128x16xf32>
    %c0_3 = arith.constant 0 : index
    %c0_4 = arith.constant 0 : index
    %2 = vector.load %arg3[%c0_3, %c0_4] : memref<6x16xf32, #tpu.memory_space<vmem>>, vector<6x16xf32>
    %c0_5 = arith.constant 0 : index
    %c0_6 = arith.constant 0 : index
    %3 = vector.load %arg4[%c0_5, %c0_6] : memref<16x128xf32, #tpu.memory_space<vmem>>, vector<16x128xf32>
    %4 = arith.subf %0, %1 : vector<128x16xf32>
    %5 = arith.mulf %4, %4 : vector<128x16xf32>
    %6 = vector.shape_cast %5 : vector<128x16xf32> to vector<1x128x16xf32>
    %cst = arith.constant dense<0.000000e+00> : vector<1xf32>
    %7 = vector.multi_reduction <add>, %6, %cst [1, 2] : vector<1x128x16xf32> to vector<1xf32>
    %8 = vector.shape_cast %7 : vector<1xf32> to vector<1x1x1xf32>
    %9 = vector.extract %8[0, 0, 0] : f32 from vector<1x1x1xf32>
    %cst_7 = arith.constant 0.000000e+00 : f32
    %cst_8 = arith.constant 1.000000e+00 : f32
    %10 = vector.broadcast %cst_7 : f32 to vector<128x16xf32>
    %11 = arith.maximumf %10, %0 : vector<128x16xf32>
    %12 = vector.broadcast %cst_8 : f32 to vector<128x16xf32>
    %13 = arith.minimumf %12, %11 : vector<128x16xf32>
    %cst_9 = arith.constant 0.000000e+00 : f32
    %cst_10 = arith.constant 1.000000e+00 : f32
    %14 = vector.broadcast %cst_9 : f32 to vector<128x16xf32>
    %15 = arith.maximumf %14, %1 : vector<128x16xf32>
    %16 = vector.broadcast %cst_10 : f32 to vector<128x16xf32>
    %17 = arith.minimumf %16, %15 : vector<128x16xf32>
    %18 = arith.mulf %13, %13 : vector<128x16xf32>
    %19 = arith.mulf %17, %17 : vector<128x16xf32>
    %20 = arith.mulf %13, %17 : vector<128x16xf32>
    %21 = vector.shape_cast %2 : vector<6x16xf32> to vector<1x6x16xf32>
    %22 = vector.broadcast %21 : vector<1x6x16xf32> to vector<8x6x16xf32>
    %cst_11 = arith.constant dense<0.000000e+00> : vector<128x128xf32>
    %23 = tpu.matmul %13, %3, %cst_11 {dimension_numbers = #tpu.dot_dimension_numbers<[1], [0], [0], [1], [0, 0, 1, 1], [], []>} : vector<128x16xf32>, vector<16x128xf32>, vector<128x128xf32> -> vector<128x128xf32>
    %24 = vector.shape_cast %23 : vector<128x128xf32> to vector<8x16x128xf32>
    "tpu.trace_start"() <{level = 10 : i32, message = "pvh,phw->pvw"}> : () -> ()
    %cst_12 = arith.constant dense<0.000000e+00> : vector<8x6x128xf32>
    %25 = tpu.matmul %22, %24, %cst_12 {dimension_numbers = #tpu.dot_dimension_numbers<[2], [1], [1], [2], [0, 0, 0, 1, 1, 2], [0], [0]>} : vector<8x6x16xf32>, vector<8x16x128xf32>, vector<8x6x128xf32> -> vector<8x6x128xf32>
    "tpu.trace_stop"() : () -> ()
    %cst_13 = arith.constant dense<0.000000e+00> : vector<128x128xf32>
    %26 = tpu.matmul %17, %3, %cst_13 {dimension_numbers = #tpu.dot_dimension_numbers<[1], [0], [0], [1], [0, 0, 1, 1], [], []>} : vector<128x16xf32>, vector<16x128xf32>, vector<128x128xf32> -> vector<128x128xf32>
    %27 = vector.shape_cast %26 : vector<128x128xf32> to vector<8x16x128xf32>
    "tpu.trace_start"() <{level = 10 : i32, message = "pvh,phw->pvw"}> : () -> ()
    %cst_14 = arith.constant dense<0.000000e+00> : vector<8x6x128xf32>
    %28 = tpu.matmul %22, %27, %cst_14 {dimension_numbers = #tpu.dot_dimension_numbers<[2], [1], [1], [2], [0, 0, 0, 1, 1, 2], [0], [0]>} : vector<8x6x16xf32>, vector<8x16x128xf32>, vector<8x6x128xf32> -> vector<8x6x128xf32>
    "tpu.trace_stop"() : () -> ()
    %cst_15 = arith.constant dense<0.000000e+00> : vector<128x128xf32>
    %29 = tpu.matmul %18, %3, %cst_15 {dimension_numbers = #tpu.dot_dimension_numbers<[1], [0], [0], [1], [0, 0, 1, 1], [], []>} : vector<128x16xf32>, vector<16x128xf32>, vector<128x128xf32> -> vector<128x128xf32>
    %30 = vector.shape_cast %29 : vector<128x128xf32> to vector<8x16x128xf32>
    "tpu.trace_start"() <{level = 10 : i32, message = "pvh,phw->pvw"}> : () -> ()
    %cst_16 = arith.constant dense<0.000000e+00> : vector<8x6x128xf32>
    %31 = tpu.matmul %22, %30, %cst_16 {dimension_numbers = #tpu.dot_dimension_numbers<[2], [1], [1], [2], [0, 0, 0, 1, 1, 2], [0], [0]>} : vector<8x6x16xf32>, vector<8x16x128xf32>, vector<8x6x128xf32> -> vector<8x6x128xf32>
    "tpu.trace_stop"() : () -> ()
    %cst_17 = arith.constant dense<0.000000e+00> : vector<128x128xf32>
    %32 = tpu.matmul %19, %3, %cst_17 {dimension_numbers = #tpu.dot_dimension_numbers<[1], [0], [0], [1], [0, 0, 1, 1], [], []>} : vector<128x16xf32>, vector<16x128xf32>, vector<128x128xf32> -> vector<128x128xf32>
    %33 = vector.shape_cast %32 : vector<128x128xf32> to vector<8x16x128xf32>
    "tpu.trace_start"() <{level = 10 : i32, message = "pvh,phw->pvw"}> : () -> ()
    %cst_18 = arith.constant dense<0.000000e+00> : vector<8x6x128xf32>
    %34 = tpu.matmul %22, %33, %cst_18 {dimension_numbers = #tpu.dot_dimension_numbers<[2], [1], [1], [2], [0, 0, 0, 1, 1, 2], [0], [0]>} : vector<8x6x16xf32>, vector<8x16x128xf32>, vector<8x6x128xf32> -> vector<8x6x128xf32>
    "tpu.trace_stop"() : () -> ()
    %cst_19 = arith.constant dense<0.000000e+00> : vector<128x128xf32>
    %35 = tpu.matmul %20, %3, %cst_19 {dimension_numbers = #tpu.dot_dimension_numbers<[1], [0], [0], [1], [0, 0, 1, 1], [], []>} : vector<128x16xf32>, vector<16x128xf32>, vector<128x128xf32> -> vector<128x128xf32>
    %36 = vector.shape_cast %35 : vector<128x128xf32> to vector<8x16x128xf32>
    "tpu.trace_start"() <{level = 10 : i32, message = "pvh,phw->pvw"}> : () -> ()
    %cst_20 = arith.constant dense<0.000000e+00> : vector<8x6x128xf32>
    %37 = tpu.matmul %22, %36, %cst_20 {dimension_numbers = #tpu.dot_dimension_numbers<[2], [1], [1], [2], [0, 0, 0, 1, 1, 2], [0], [0]>} : vector<8x6x16xf32>, vector<8x16x128xf32>, vector<8x6x128xf32> -> vector<8x6x128xf32>
    "tpu.trace_stop"() : () -> ()
    %38 = arith.mulf %25, %25 : vector<8x6x128xf32>
    %39 = arith.mulf %28, %28 : vector<8x6x128xf32>
    %40 = arith.mulf %25, %28 : vector<8x6x128xf32>
    %41 = arith.subf %31, %38 : vector<8x6x128xf32>
    %42 = arith.subf %34, %39 : vector<8x6x128xf32>
    %43 = arith.subf %37, %40 : vector<8x6x128xf32>
    %cst_21 = arith.constant 2.000000e+00 : f32
    %44 = vector.broadcast %cst_21 : f32 to vector<8x6x128xf32>
    %45 = arith.mulf %44, %40 : vector<8x6x128xf32>
    %cst_22 = arith.constant 9.99999974E-5 : f32
    %46 = vector.broadcast %cst_22 : f32 to vector<8x6x128xf32>
    %47 = arith.addf %45, %46 : vector<8x6x128xf32>
    %cst_23 = arith.constant 2.000000e+00 : f32
    %48 = vector.broadcast %cst_23 : f32 to vector<8x6x128xf32>
    %49 = arith.mulf %48, %43 : vector<8x6x128xf32>
    %cst_24 = arith.constant 8.99999984E-4 : f32
    %50 = vector.broadcast %cst_24 : f32 to vector<8x6x128xf32>
    %51 = arith.addf %49, %50 : vector<8x6x128xf32>
    %52 = arith.mulf %47, %51 : vector<8x6x128xf32>
    %53 = arith.addf %38, %39 : vector<8x6x128xf32>
    %cst_25 = arith.constant 9.99999974E-5 : f32
    %54 = vector.broadcast %cst_25 : f32 to vector<8x6x128xf32>
    %55 = arith.addf %53, %54 : vector<8x6x128xf32>
    %56 = arith.addf %41, %42 : vector<8x6x128xf32>
    %cst_26 = arith.constant 8.99999984E-4 : f32
    %57 = vector.broadcast %cst_26 : f32 to vector<8x6x128xf32>
    %58 = arith.addf %56, %57 : vector<8x6x128xf32>
    %59 = arith.mulf %55, %58 : vector<8x6x128xf32>
    %60 = tpu.reciprocal %59 {approx = true} : vector<8x6x128xf32> -> vector<8x6x128xf32>
    %61 = arith.mulf %52, %60 : vector<8x6x128xf32>
    %62 = tpu.iota {dimensions = array<i32: 2>} : vector<8x6x128xi32>
    %c6_i32 = arith.constant 6 : i32
    %63 = vector.broadcast %c6_i32 : i32 to vector<8x6x128xi32>
    %64 = arith.cmpi slt, %62, %63 : vector<8x6x128xi32>
    %cst_27 = arith.constant 0.000000e+00 : f32
    %65 = vector.broadcast %cst_27 : f32 to vector<8x6x128xf32>
    %66 = arith.select %64, %61, %65 : vector<8x6x128xi1>, vector<8x6x128xf32>
    %67 = vector.shape_cast %66 : vector<8x6x128xf32> to vector<1x8x6x128xf32>
    %cst_28 = arith.constant dense<0.000000e+00> : vector<1xf32>
    %68 = vector.multi_reduction <add>, %67, %cst_28 [1, 2, 3] : vector<1x8x6x128xf32> to vector<1xf32>
    %69 = vector.shape_cast %68 : vector<1xf32> to vector<1x1x1x1xf32>
    %70 = vector.extract %69[0, 0, 0, 0] : f32 from vector<1x1x1x1xf32>
    %cst_29 = arith.constant 0.000000e+00 : f32
    %71 = vector.broadcast %cst_29 : f32 to vector<8x128xf32>
    %72 = vector.broadcast %9 : f32 to vector<8x128xf32>
    %73 = arith.addf %72, %71 : vector<8x128xf32>
    %c0_30 = arith.constant 0 : index
    %c0_31 = arith.constant 0 : index
    %c0_32 = arith.constant 0 : index
    %74 = vector.load %arg5[%c0_30, %c0_31, %c0_32] : memref<1x8x128xf32, #tpu.memory_space<vmem>>, vector<1x8x128xf32>
    %75 = vector.shape_cast %74 : vector<1x8x128xf32> to vector<8x128xf32>
    %76 = vector.shape_cast %73 : vector<8x128xf32> to vector<1x8x128xf32>
    tpu.vector_store %arg5[%c0_30, %c0_31, %c0_32], %76 {strides = array<i32>} : memref<1x8x128xf32, #tpu.memory_space<vmem>>, vector<1x8x128xf32>,
    %cst_33 = arith.constant 0.000000e+00 : f32
    %77 = vector.broadcast %cst_33 : f32 to vector<8x128xf32>
    %78 = vector.broadcast %70 : f32 to vector<8x128xf32>
    %79 = arith.addf %78, %77 : vector<8x128xf32>
    %c0_34 = arith.constant 0 : index
    %c0_35 = arith.constant 0 : index
    %c0_36 = arith.constant 0 : index
    %80 = vector.load %arg6[%c0_34, %c0_35, %c0_36] : memref<1x8x128xf32, #tpu.memory_space<vmem>>, vector<1x8x128xf32>
    %81 = vector.shape_cast %80 : vector<1x8x128xf32> to vector<8x128xf32>
    %82 = vector.shape_cast %79 : vector<8x128xf32> to vector<1x8x128xf32>
    tpu.vector_store %arg6[%c0_34, %c0_35, %c0_36], %82 {strides = array<i32>} : memref<1x8x128xf32, #tpu.memory_space<vmem>>, vector<1x8x128xf32>,
    return
  }
  func.func @transform_0(%arg0: i32) -> (i32, i32) {
    %c0_i32 = arith.constant 0 : i32
    %c0_i32_0 = arith.constant 0 : i32
    return %arg0, %c0_i32 : i32, i32
  }
  func.func @transform_1(%arg0: i32) -> (i32, i32) {
    %c0_i32 = arith.constant 0 : i32
    %c0_i32_0 = arith.constant 0 : i32
    return %arg0, %c0_i32 : i32, i32
  }
  func.func @transform_2(%arg0: i32) -> (i32, i32) {
    %c0_i32 = arith.constant 0 : i32
    %c0_i32_0 = arith.constant 0 : i32
    %c0_i32_1 = arith.constant 0 : i32
    return %c0_i32, %c0_i32_0 : i32, i32
  }
  func.func @transform_3(%arg0: i32) -> (i32, i32) {
    %c0_i32 = arith.constant 0 : i32
    %c0_i32_0 = arith.constant 0 : i32
    %c0_i32_1 = arith.constant 0 : i32
    return %c0_i32, %c0_i32_0 : i32, i32
  }
  func.func @transform_4(%arg0: i32) -> (i32, i32, i32) {
    %c0_i32 = arith.constant 0 : i32
    %c0_i32_0 = arith.constant 0 : i32
    %c0_i32_1 = arith.constant 0 : i32
    return %arg0, %c0_i32, %c0_i32_0 : i32, i32, i32
  }
  func.func @transform_5(%arg0: i32) -> (i32, i32, i32) {
    %c0_i32 = arith.constant 0 : i32
    %c0_i32_0 = arith.constant 0 : i32
    %c0_i32_1 = arith.constant 0 : i32
    return %arg0, %c0_i32, %c0_i32_0 : i32, i32, i32
  }
}

</mosaic_0001>

<bundles_post_ra>
// kernel: tpu_custom_call.1
= control target key start
LH: loop header
LB: loop body
LE: loop exit
PB: predicated region body
PF: predicated region fallthrough
CT: control target
= control target key end

     0   :  { %11 = vsyncpa [#allocation3], 0  ;;  %vm88_vm0 = vcmask 130048   ;;  %s6135_s0 = inlined_call_operand.vmem [shape: f32[128,16], index: 0, kind: input, shape index: {}]   ;;  %s6136_s1 = inlined_call_operand.vmem [shape: f32[128,16], index: 1, kind: input, shape index: {}]   ;;  %s6137_s2 = inlined_call_operand.vmem [shape: f32[6,16], index: 2, kind: input, shape index: {}]   ;;  %s6138_s3 = inlined_call_operand.vmem [shape: f32[16,128], index: 3, kind: input, shape index: {}]   ;;  %s6139_s4 = inlined_call_operand.hbm [shape: f32[1,8,128], index: 4, kind: output, shape index: {0}]   ;;  %s6140_s5 = inlined_call_operand.hbm [shape: f32[1,8,128], index: 5, kind: output, shape index: {1}]  }
   0x1   :  { %v54_v0 = vld [vmem:[%s6138_s3] sm:$0xff]  ;;  %v55_v1 = vld [vmem:[%s6138_s3 + $0x8] sm:$0xff]  ;;  %v23_v12 = vld [vmem:[%s6135_s0 + $0x10] sm:$0xff] }
   0x2   :  { %v21_v2 = vld [vmem:[%s6135_s0] sm:$0xff]  ;;  %v5230_v3 = vpack.c.bf16 %v55_v1, %v54_v0  ;;  %v22_v6 = vld [vmem:[%s6135_s0 + $0x8] sm:$0xff]  ;;  %v24_v13 = vld [vmem:[%s6135_s0 + $0x18] sm:$0xff]  ;;  %v131_v16 = vmax.f32 %v23_v12, 0.0 }
   0x3   :  { %v5235_v4 = vld [vmem:[%s6136_s1] sm:$0xff]  ;;  %v129_v5 = vmax.f32 %v21_v2, 0.0  ;;  %v38_v7 = vld [vmem:[%s6136_s1 + $0x8] sm:$0xff]  ;;  %v130_v10 = vmax.f32 %v22_v6, 0.0  ;;  %v132_v17 = vmax.f32 %v24_v13, 0.0  ;;  %v27_v25 = vld [vmem:[%s6135_s0 + $0x30] sm:$0xff] }
   0x4   :  { %v56_v8 = vsub.f32 %v21_v2, %v5235_v4  ;;  %v57_v9 = vsub.f32 %v22_v6, %v38_v7  ;;  %v162_v11 = vmax.f32 %v38_v7, 0.0  ;;  %v25_v14 = vld [vmem:[%s6135_s0 + $0x20] sm:$0xff]  ;;  %4974 = vmatprep.subr.bf16.mxu0 %v5230_v3  ;;  %v26_v22 = vld [vmem:[%s6135_s0 + $0x28] sm:$0xff]  ;;  %v5267_v24 = vmin.f32 %v131_v16, 1.0  ;;  %v28_v34 = vld [vmem:[%s6135_s0 + $0x38] sm:$0xff] }
   0x5   :  { %v5254_v15 = vmin.f32 %v129_v5, 1.0  ;;  %4976 = vmatpush3.bf16.msra.mxu0 %v5230_v3  ;;  %v5257_v20 = vmin.f32 %v130_v10, 1.0  ;;  %v133_v21 = vmax.f32 %v25_v14, 0.0  ;;  %v5280_v30 = vmin.f32 %v132_v17, 1.0  ;;  %v29_v35 = vld [vmem:[%s6135_s0 + $0x40] sm:$0xff]  ;;  %v30_v38 = vld [vmem:[%s6135_s0 + $0x48] sm:$0xff] }
   0x6   :  { %v72_v18 = vmul.f32 %v56_v8, %v56_v8  ;;  %v73_v19 = vmul.f32 %v57_v9, %v57_v9  ;;  %v5264_v23 = vmin.f32 %v162_v11, 1.0  ;;  %5002 = vmatprep.subr.bf16.mxu0 %v5230_v3  ;;  %v134_v31 = vmax.f32 %v26_v22, 0.0  ;;  %v5304_v39 = vld [vmem:[%s6136_s1 + $0x10] sm:$0xff]  ;;  %v5317_v44 = vld [vmem:[%s6136_s1 + $0x18] sm:$0xff]  ;;  %v5322_v45 = vld [vmem:[%s6136_s1 + $0x20] sm:$0xff] }
   0x7   :  { %4557 = vmatprep.mubr.msk.f32.mxu0 %vm88_vm0, %v5254_v15  ;;  %v5285_v32 = vmin.f32 %v133_v21, 1.0  ;;  %v135_v33 = vmax.f32 %v27_v25, 0.0  ;;  %v136_v37 = vmax.f32 %v28_v34, 0.0  ;;  %v137_v41 = vmax.f32 %v29_v35, 0.0  ;;  %v31_v42 = vld [vmem:[%s6135_s0 + $0x50] sm:$0xff] }
   0x8   :  { %v89_v26 = vsel %vm88_vm0, %v72_v18, 0.0  ;;  %v90_v27 = vsel %vm88_vm0, %v73_v19, 0.0  ;;  %v5276_v29 = vmul.f32 %v5264_v23, %v5257_v20  ;;  %4558 = vmatmul.mubr.msk.f32.vlgmr.msra.gmra.mrb[0].mxu0 %vm88_vm0, %v5257_v20  ;;  %v5296_v36 = vmin.f32 %v134_v31, 1.0 }
   0x9   :  { %v91_v28 = vadd.f32 %v90_v27, %v89_v26  ;;  %5004 = vmatpush3.bf16.msra.mxu0 %v5230_v3  ;;  %4560 = vmatprep.mubr.msk.f32.mxu0 %vm88_vm0, %v5267_v24  ;;  %v5308_v40 = vmin.f32 %v135_v33, 1.0  ;;  %v58_v43 = vsub.f32 %v23_v12, %v5304_v39  ;;  %v59_v46 = vsub.f32 %v24_v13, %v5317_v44 }
   0xa   :  { %5030 = vmatprep.subr.bf16.mxu0 %v5230_v3  ;;  %v60_v47 = vsub.f32 %v25_v14, %v5322_v45 }
   0xc   :  { %4561 = vmatmul.mubr.msk.f32.gmra.mrb[2].mxu0 %vm88_vm0, %v5280_v30 }
   0xd   :  { %4563 = vmatprep.mubr.msk.f32.mxu0 %vm88_vm0, %v5285_v32 }
   0xe   :  { %12 = vsyncpa [#allocation5], 0  ;;  %v138_v48 = vmax.f32 %v30_v38, 0.0  ;;  %v74_v49 = vmul.f32 %v58_v43, %v58_v43  ;;  %v5328_v50 = vmin.f32 %v136_v37, 1.0  ;;  %v139_v51 = vmax.f32 %v31_v42, 0.0  ;;  %v32_v52 = vld [vmem:[%s6135_s0 + $0x58] sm:$0xff] }
   0xf   :  { %v75_v53 = vmul.f32 %v59_v46, %v59_v46  ;;  %v76_v54 = vmul.f32 %v60_v47, %v60_v47  ;;  %v5336_v55 = vld [vmem:[%s6136_s1 + $0x28] sm:$0xff]  ;;  %v5341_v56 = vld [vmem:[%s6136_s1 + $0x30] sm:$0xff]  ;;  %v5345_v57 = vmin.f32 %v137_v41, 1.0  ;;  %v5353_v61 = vld [vmem:[%s6135_s0 + $0x60] sm:$0xff]  ;;  %v140_v0 = vmax.f32 %v32_v52, 0.0  ;;  %s5189_s8 = smov [#allocation2]  }
  0x10   :  { %4564 = vmatmul.mubr.msk.f32.gmra.mrb[4].mxu0 %vm88_vm0, %v5296_v36  ;;  %v92_v58 = vsel %vm88_vm0, %v74_v49, 0.0  ;;  %v61_v59 = vsub.f32 %v26_v22, %v5336_v55  ;;  %v62_v60 = vsub.f32 %v27_v25, %v5341_v56  ;;  %v5360_v6 = vld [vmem:[%s6136_s1 + $0x38] sm:$0xff]  ;;  %v5365_v7 = vld [vmem:[%s6136_s1 + $0x40] sm:$0xff]  ;;  %v5369_v8 = vmin.f32 %v138_v48, 1.0  ;;  %v5381_v14 = vld [vmem:[%s6135_s0 + $0x68] sm:$0xff]  ;;  %s4201_s9 = sshll.u32 %s5189_s8, 4  ;;  %s4202_s9 = int_to_ptr.vmem [resolvable:$true] %s4201_s9 }
  0x11   :  { %4566 = vmatprep.mubr.msk.f32.mxu0 %vm88_vm0, %v5308_v40  ;;  %v93_v62 = vadd.f32 %v92_v58, %v91_v28  ;;  %v94_v63 = vsel %vm88_vm0, %v75_v53, 0.0  ;;  %v96_v1 = vsel %vm88_vm0, %v76_v54, 0.0  ;;  %v63_v10 = vsub.f32 %v28_v34, %v5360_v6  ;;  %v5387_v17 = vld [vmem:[%s6135_s0 + $0x70] sm:$0xff]  ;;  %v46_v21 = vld [vmem:[%s6136_s1 + $0x48] sm:$0xff]  ;;  %v5398_v25 = vld [vmem:[%s6135_s0 + $0x78] sm:$0xff]  ;;  %s5138_s10 = scalar_lea.vmem %s4202_s9, 128  ;;  %p5143_p1 = scmp.lt.s32.totalorder %s4202_s9, %s4202_s9 }
  0x12   :  { %v77_v2 = vmul.f32 %v61_v59, %v61_v59  ;;  %v78_v5 = vmul.f32 %v62_v60, %v62_v60  ;;  %v64_v11 = vsub.f32 %v29_v35, %v5365_v7  ;;  %v5375_v12 = vmin.f32 %v139_v51, 1.0  ;;  %v47_v22 = vld [vmem:[%s6136_s1 + $0x50] sm:$0xff]  ;;  %6142 = vst [vmem:[#allocation8_spill] sm:$0xff] %v5398_v25  ;;  %v48_v37 = vld [vmem:[%s6136_s1 + $0x58] sm:$0xff]  ;;  %v5437_v59 = vld [vmem:[%s6136_s1 + $0x60] sm:$0xff]  ;;  %p5139_p0 = scmp.ne.s32.totalorder %s4202_s9, %s5138_s10  ;;  %p5144_p2 = scmp.lt.s32.totalorder %s5138_s10, %s5138_s10 }
  0x13   :  { %v95_v9 = vadd.f32 %v94_v63, %v93_v62  ;;  %v141_v13 = vmax.f32 %v5353_v61, 0.0  ;;  %v79_v19 = vmul.f32 %v63_v10, %v63_v10  ;;  %v5401_v28 = vsub.f32 %v30_v38, %v46_v21  ;;  %v5442_v60 = vld [vmem:[%s6136_s1 + $0x68] sm:$0xff] }
  0x14   :  { %4567 = vmatmul.mubr.msk.f32.gmra.mrb[6].mxu0 %vm88_vm0, %v5328_v50  ;;  %v98_v16 = vsel %vm88_vm0, %v77_v2, 0.0  ;;  %v100_v26 = vsel %vm88_vm0, %v78_v5, 0.0  ;;  %v80_v27 = vmul.f32 %v64_v11, %v64_v11  ;;  %v5403_v31 = vsub.f32 %v31_v42, %v47_v22  ;;  %p5145_p3 = por %p5144_p2, %p5143_p1 }
  0x15   :  { %4569 = vmatprep.mubr.msk.f32.mxu0 %vm88_vm0, %v5345_v57  ;;  %v97_v18 = vadd.f32 %v96_v1, %v95_v9  ;;  %v5407_v33 = vmin.f32 %v140_v0, 1.0  ;;  %v142_v34 = vmax.f32 %v5381_v14, 0.0  ;;  %v5415_v41 = vmin.f32 %v141_v13, 1.0 }
  0x16   :  { %v143_v38 = vmax.f32 %v5387_v17, 0.0  ;;  %v102_v42 = vsel %vm88_vm0, %v79_v19, 0.0  ;;  %v5419_v43 = vsub.f32 %v32_v52, %v48_v37  ;;  %v144_v46 = vmax.f32 %v5398_v25, 0.0  ;;  %p5146_p4 = pnand %p5145_p3, %p5139_p0 }
  0x17   :  { %v99_v35 = vadd.f32 %v98_v16, %v97_v18  ;;  %v104_v48 = vsel %vm88_vm0, %v80_v27, 0.0  ;;  %v5425_v49 = vmin.f32 %v142_v34, 1.0  ;;  %v161_v54 = vmax.f32 %v5235_v4, 0.0 }
  0x18   :  { %4570 = vmatmul.mubr.msk.f32.gmra.mrb[8].mxu0 %vm88_vm0, %v5369_v8  ;;  %v5429_v53 = vmin.f32 %v143_v38, 1.0  ;;  %v163_v52 = vmax.f32 %v5304_v39, 0.0  ;;  %v164_v58 = vmax.f32 %v5317_v44, 0.0  ;;  %v5444_v62 = vmin.f32 %v144_v46, 1.0  ;;  %v5453_v39 = vld [vmem:[%s6136_s1 + $0x70] sm:$0xff]  ;;  %v5458_v44 = vld [vmem:[%s6136_s1 + $0x78] sm:$0xff] }
  0x19   :  { %4572 = vmatprep.mubr.msk.f32.mxu0 %vm88_vm0, %v5375_v12  ;;  %v101_v47 = vadd.f32 %v100_v26, %v99_v35  ;;  %v165_v63 = vmax.f32 %v5322_v45, 0.0  ;;  %v166_v4 = vmax.f32 %v5336_v55, 0.0  ;;  %v167_v1 = vmax.f32 %v5341_v56, 0.0 }
  0x1a   :  { %v168_v2 = vmax.f32 %v5360_v6, 0.0  ;;  %v169_v45 = vmax.f32 %v5365_v7, 0.0  ;;  %v170_v5 = vmax.f32 %v46_v21, 0.0  ;;  %v171_v55 = vmax.f32 %v47_v22, 0.0 }
  0x1b   :  { %v103_v51 = vadd.f32 %v102_v42, %v101_v47  ;;  %v172_v9 = vmax.f32 %v48_v37, 0.0  ;;  %v173_v10 = vmax.f32 %v5437_v59, 0.0  ;;  %v174_v11 = vmax.f32 %v5442_v60, 0.0 }
  0x1c   :  { %4573 = vmatmul.mubr.msk.f32.gmra.mrb[10].mxu0 %vm88_vm0, %v5407_v33  ;;  %v5469_v13 = vmin.f32 %v161_v54, 1.0  ;;  %v175_v56 = vmax.f32 %v5453_v39, 0.0  ;;  %v176_v6 = vmax.f32 %v5458_v44, 0.0  ;;  %v5473_v7 = vmin.f32 %v163_v52, 1.0 }
  0x1d   :  { %4575 = vmatprep.mubr.msk.f32.mxu0 %vm88_vm0, %v5415_v41  ;;  %v5448_v0 = vadd.f32 %v104_v48, %v103_v51  ;;  %v5475_v16 = vmin.f32 %v164_v58, 1.0  ;;  %v5477_v18 = vmin.f32 %v165_v63, 1.0  ;;  %v5479_v19 = vmin.f32 %v166_v4, 1.0 }
  0x1e   :  { %v5481_v21 = vmin.f32 %v167_v1, 1.0  ;;  %v5483_v22 = vmin.f32 %v168_v2, 1.0  ;;  %v5485_v26 = vmin.f32 %v169_v45, 1.0  ;;  %v5487_v27 = vmin.f32 %v170_v5, 1.0 }
  0x1f   :  { %v5491_v34 = vmin.f32 %v171_v55, 1.0  ;;  %v5493_v35 = vmin.f32 %v172_v9, 1.0  ;;  %v5495_v37 = vmin.f32 %v173_v10, 1.0  ;;  %v5497_v38 = vmin.f32 %v174_v11, 1.0 }
  0x20   :  { %4576 = vmatmul.mubr.msk.f32.gmra.mrb[12].mxu0 %vm88_vm0, %v5425_v49  ;;  %v5501_v42 = vmin.f32 %v175_v56, 1.0  ;;  %v5503_v46 = vmin.f32 %v176_v6, 1.0  ;;  %v5507_v47 = vmul.f32 %v5469_v13, %v5254_v15  ;;  %v5511_v48 = vmul.f32 %v5473_v7, %v5267_v24 }
  0x21   :  { %4578 = vmatprep.mubr.msk.f32.mxu0 %vm88_vm0, %v5429_v53  ;;  %v5515_v51 = vmul.f32 %v5475_v16, %v5280_v30  ;;  %v5519_v54 = vmul.f32 %v5477_v18, %v5285_v32  ;;  %v5523_v52 = vmul.f32 %v5479_v19, %v5296_v36  ;;  %v5527_v58 = vmul.f32 %v5481_v21, %v5308_v40 }
  0x22   :  { %v5531_v63 = vmul.f32 %v5483_v22, %v5328_v50  ;;  %v5535_v4 = vmul.f32 %v5485_v26, %v5345_v57  ;;  %v5539_v1 = vmul.f32 %v5487_v27, %v5369_v8  ;;  %v5543_v2 = vmul.f32 %v5491_v34, %v5375_v12 }
  0x23   :  { %v5549_v45 = vmul.f32 %v5493_v35, %v5407_v33  ;;  %v5553_v5 = vmul.f32 %v5495_v37, %v5415_v41  ;;  %v5557_v55 = vmul.f32 %v5497_v38, %v5425_v49  ;;  %v5561_v9 = vmul.f32 %v5501_v42, %v5429_v53 }
  0x24   :  { %4579 = vmatmul.mubr.msk.f32.gmra.mrb[14].mxu0 %vm88_vm0, %v5444_v62  ;;  %v5568_v10 = vmul.f32 %v5503_v46, %v5444_v62  ;;  %v193_v11 = vmul.f32 %v5254_v15, %v5254_v15  ;;  %v194_v56 = vmul.f32 %v5257_v20, %v5257_v20  ;;  %v195_v6 = vmul.f32 %v5267_v24, %v5267_v24 }
  0x25   :  { %4641 = vmatprep.mubr.msk.f32.mxu0 %vm88_vm0, %v5469_v13  ;;  %v196_v25 = vmul.f32 %v5280_v30, %v5280_v30  ;;  %v197_v15 = vmul.f32 %v5285_v32, %v5285_v32  ;;  %v198_v20 = vmul.f32 %v5296_v36, %v5296_v36  ;;  %v199_v24 = vmul.f32 %v5308_v40, %v5308_v40 }
  0x26   :  { %v200_v30 = vmul.f32 %v5328_v50, %v5328_v50  ;;  %v201_v32 = vmul.f32 %v5345_v57, %v5345_v57  ;;  %v202_v36 = vmul.f32 %v5369_v8, %v5369_v8  ;;  %v203_v40 = vmul.f32 %v5375_v12, %v5375_v12 }
  0x27   :  { %v204_v50 = vmul.f32 %v5407_v33, %v5407_v33  ;;  %v205_v57 = vmul.f32 %v5415_v41, %v5415_v41  ;;  %v206_v8 = vmul.f32 %v5425_v49, %v5425_v49  ;;  %v207_v12 = vmul.f32 %v5429_v53, %v5429_v53 }
  0x28   :  { %4642 = vmatmul.mubr.msk.f32.vlgmr.msra.gmra.mrb[16].mxu0 %vm88_vm0, %v5264_v23  ;;  %v208_v33 = vmul.f32 %v5444_v62, %v5444_v62  ;;  %v209_v41 = vmul.f32 %v5469_v13, %v5469_v13  ;;  %vm5187_vm1 = vmmov 0   ;;  %v5188_v49 = vmov 0.0  }
  0x29   :  { %5032 = vmatpush3.bf16.msra.mxu0 %v5230_v3  ;;  %4644 = vmatprep.mubr.msk.f32.mxu0 %vm88_vm0, %v5473_v7  ;;  %v210_v53 = vmul.f32 %v5264_v23, %v5264_v23  ;;  %v211_v62 = vmul.f32 %v5473_v7, %v5473_v7  ;;  %v212_v13 = vmul.f32 %v5475_v16, %v5475_v16  ;;  %vm4164_vm3 = vcmask 1045504  }
  0x2a   :  { %5058 = vmatprep.subr.bf16.mxu0 %v5230_v3  ;;  %4585 = vmatprep.mubr.msk.f32.mxu1 %vm5187_vm1, %v5188_v49  ;;  %v214_v23 = vmul.f32 %v5479_v19, %v5479_v19  ;;  %v215_v7 = vmul.f32 %v5481_v21, %v5481_v21 }
  0x2c   :  { %4645 = vmatmul.mubr.msk.f32.gmra.mrb[18].mxu0 %vm88_vm0, %v5475_v16  ;;  %v217_v16 = vmul.f32 %v5485_v26, %v5485_v26 }
  0x2d   :  { %4647 = vmatprep.mubr.msk.f32.mxu0 %vm88_vm0, %v5477_v18 }
  0x30   :  { %4648 = vmatmul.mubr.msk.f32.gmra.mrb[20].mxu0 %vm88_vm0, %v5479_v19  ;;  %v219_v19 = vmul.f32 %v5491_v34, %v5491_v34 }
  0x31   :  { %4650 = vmatprep.mubr.msk.f32.mxu0 %vm88_vm0, %v5481_v21  ;;  %v220_v21 = vmul.f32 %v5493_v35, %v5493_v35 }
  0x34   :  { %4651 = vmatmul.mubr.msk.f32.gmra.mrb[22].mxu0 %vm88_vm0, %v5483_v22 }
  0x35   :  { %4653 = vmatprep.mubr.msk.f32.mxu0 %vm88_vm0, %v5485_v26  ;;  %v222_v26 = vmul.f32 %v5497_v38, %v5497_v38 }
  0x38   :  { %4654 = vmatmul.mubr.msk.f32.gmra.mrb[24].mxu0 %vm88_vm0, %v5487_v27 }
  0x39   :  { %4656 = vmatprep.mubr.msk.f32.mxu0 %vm88_vm0, %v5491_v34  ;;  %v224_v34 = vmul.f32 %v5503_v46, %v5503_v46 }
  0x3c   :  { %4657 = vmatmul.mubr.msk.f32.gmra.mrb[26].mxu0 %vm88_vm0, %v5493_v35 }
  0x3d   :  { %4659 = vmatprep.mubr.msk.f32.mxu0 %vm88_vm0, %v5495_v37 }
  0x40   :  { %4660 = vmatmul.mubr.msk.f32.gmra.mrb[28].mxu0 %vm88_vm0, %v5497_v38 }
  0x41   :  { %4662 = vmatprep.mubr.msk.f32.mxu0 %vm88_vm0, %v5501_v42 }
  0x44   :  { %4663 = vmatmul.mubr.msk.f32.gmra.mrb[30].mxu0 %vm88_vm0, %v5503_v46 }
  0x45   :  { %4725 = vmatprep.mubr.msk.f32.mxu0 %vm88_vm0, %v193_v11  ;;  %v213_v11 = vmul.f32 %v5477_v18, %v5477_v18  ;;  %v218_v18 = vmul.f32 %v5487_v27, %v5487_v27  ;;  %v223_v27 = vmul.f32 %v5501_v42, %v5501_v42  ;;  %v5734_v42 = vld [vmem:[%s6137_s2] sm:$0x3f] }
  0x48   :  { %4726 = vmatmul.mubr.msk.f32.vlgmr.msra.gmra.mrb[32].mxu0 %vm88_vm0, %v194_v56 }
  0x49   :  { %5060 = vmatpush3.bf16.msra.mxu0 %v5230_v3  ;;  %4728 = vmatprep.mubr.msk.f32.mxu0 %vm88_vm0, %v195_v6 }
  0x4a   :  { %5086 = vmatprep.subr.bf16.mxu0 %v5230_v3 }
  0x4c   :  { %4729 = vmatmul.mubr.msk.f32.gmra.mrb[34].mxu0 %vm88_vm0, %v196_v25  ;;  %v5186_v25 = vmov 0.0|0.0  }
  0x4d   :  { %4731 = vmatprep.mubr.msk.f32.mxu0 %vm88_vm0, %v197_v15  ;;  %4977 = vmatprep.subr.bf16.mxu1 %v5186_v25 }
  0x50   :  { %4732 = vmatmul.mubr.msk.f32.gmra.mrb[36].mxu0 %vm88_vm0, %v198_v20 }
  0x51   :  { %4734 = vmatprep.mubr.msk.f32.mxu0 %vm88_vm0, %v199_v24 }
  0x54   :  { %4735 = vmatmul.mubr.msk.f32.gmra.mrb[38].mxu0 %vm88_vm0, %v200_v30 }
  0x55   :  { %4737 = vmatprep.mubr.msk.f32.mxu0 %vm88_vm0, %v201_v32 }
  0x58   :  { %4738 = vmatmul.mubr.msk.f32.gmra.mrb[40].mxu0 %vm88_vm0, %v202_v36 }
  0x59   :  { %4740 = vmatprep.mubr.msk.f32.mxu0 %vm88_vm0, %v203_v40 }
  0x5c   :  { %4741 = vmatmul.mubr.msk.f32.gmra.mrb[42].mxu0 %vm88_vm0, %v204_v50 }
  0x5d   :  { %4743 = vmatprep.mubr.msk.f32.mxu0 %vm88_vm0, %v205_v57 }
  0x60   :  { %4744 = vmatmul.mubr.msk.f32.gmra.mrb[44].mxu0 %vm88_vm0, %v206_v8 }
  0x61   :  { %4746 = vmatprep.mubr.msk.f32.mxu0 %vm88_vm0, %v207_v12 }
  0x64   :  { %4747 = vmatmul.mubr.msk.f32.gmra.mrb[46].mxu0 %vm88_vm0, %v208_v33 }
  0x65   :  { %4809 = vmatprep.mubr.msk.f32.mxu0 %vm88_vm0, %v209_v41 }
  0x68   :  { %4810 = vmatmul.mubr.msk.f32.vlgmr.msra.gmra.mrb[48].mxu0 %vm88_vm0, %v210_v53 }
  0x69   :  { %5088 = vmatpush3.bf16.msra.mxu0 %v5230_v3  ;;  %4812 = vmatprep.mubr.msk.f32.mxu0 %vm88_vm0, %v211_v62  ;;  %v216_v3 = vmul.f32 %v5483_v22, %v5483_v22  ;;  %v221_v22 = vmul.f32 %v5495_v37, %v5495_v37 }
  0x6c   :  { %4813 = vmatmul.mubr.msk.f32.gmra.mrb[50].mxu0 %vm88_vm0, %v212_v13 }
  0x6d   :  { %4815 = vmatprep.mubr.msk.f32.mxu0 %vm88_vm0, %v213_v11 }
  0x70   :  { %4816 = vmatmul.mubr.msk.f32.gmra.mrb[52].mxu0 %vm88_vm0, %v214_v23 }
  0x71   :  { %4818 = vmatprep.mubr.msk.f32.mxu0 %vm88_vm0, %v215_v7 }
  0x74   :  { %4819 = vmatmul.mubr.msk.f32.gmra.mrb[54].mxu0 %vm88_vm0, %v216_v3 }
  0x75   :  { %4821 = vmatprep.mubr.msk.f32.mxu0 %vm88_vm0, %v217_v16 }
  0x78   :  { %4822 = vmatmul.mubr.msk.f32.gmra.mrb[56].mxu0 %vm88_vm0, %v218_v18 }
  0x79   :  { %4824 = vmatprep.mubr.msk.f32.mxu0 %vm88_vm0, %v219_v19 }
  0x7c   :  { %4825 = vmatmul.mubr.msk.f32.gmra.mrb[58].mxu0 %vm88_vm0, %v220_v21 }
  0x7d   :  { %4827 = vmatprep.mubr.msk.f32.mxu0 %vm88_vm0, %v221_v22 }
  0x80   :  { %4828 = vmatmul.mubr.msk.f32.gmra.mrb[60].mxu0 %vm88_vm0, %v222_v26 }
  0x81   :  { %4830 = vmatprep.mubr.msk.f32.mxu0 %vm88_vm0, %v223_v27 }
  0x84   :  { %4831 = vmatmul.mubr.msk.f32.gmra.mrb[62].mxu0 %vm88_vm0, %v224_v34 }
  0x85   :  { %4893 = vmatprep.mubr.msk.f32.mxu0 %vm88_vm0, %v5507_v47 }
  0x88   :  { %4894 = vmatmul.mubr.msk.f32.vlgmr.msra.gmra.mrb[64].mxu0 %vm88_vm0, %v5276_v29 }
  0x89   :  { %4896 = vmatprep.mubr.msk.f32.mxu0 %vm88_vm0, %v5511_v48 }
  0x8c   :  { %4897 = vmatmul.mubr.msk.f32.gmra.mrb[66].mxu0 %vm88_vm0, %v5515_v51 }
  0x8d   :  { %4899 = vmatprep.mubr.msk.f32.mxu0 %vm88_vm0, %v5519_v54 }
  0x90   :  { %4900 = vmatmul.mubr.msk.f32.gmra.mrb[68].mxu0 %vm88_vm0, %v5523_v52 }
  0x91   :  { %4902 = vmatprep.mubr.msk.f32.mxu0 %vm88_vm0, %v5527_v58 }
  0x94   :  { %4903 = vmatmul.mubr.msk.f32.gmra.mrb[70].mxu0 %vm88_vm0, %v5531_v63 }
  0x95   :  { %4905 = vmatprep.mubr.msk.f32.mxu0 %vm88_vm0, %v5535_v4 }
  0x98   :  { %4906 = vmatmul.mubr.msk.f32.gmra.mrb[72].mxu0 %vm88_vm0, %v5539_v1 }
  0x99   :  { %4908 = vmatprep.mubr.msk.f32.mxu0 %vm88_vm0, %v5543_v2 }
  0x9c   :  { %4909 = vmatmul.mubr.msk.f32.gmra.mrb[74].mxu0 %vm88_vm0, %v5549_v45 }
  0x9d   :  { %4911 = vmatprep.mubr.msk.f32.mxu0 %vm88_vm0, %v5553_v5 }
  0xa0   :  { %4912 = vmatmul.mubr.msk.f32.gmra.mrb[76].mxu0 %vm88_vm0, %v5557_v55 }
  0xa1   :  { %4914 = vmatprep.mubr.msk.f32.mxu0 %vm88_vm0, %v5561_v9 }
  0xa4   :  { %4915 = vmatmul.mubr.msk.f32.gmra.mrb[78].mxu0 %vm88_vm0, %v5568_v10 }
  0xdb   :  { %v4559_v29 = vpop.f32.mrb[0].mxu0 }
  0xdc   :  { %v355_v35 = vpop.f32.mrb[1].mxu0 }
  0xdd   :  { %v4978_v37 = vpack.c.bf16 %v4559_v29, %v355_v35 }
  0xdf   :  { %v4562_v38 = vpop.f32.mrb[2].mxu0  ;;  %4979 = vmatpush3.bf16.msra.mxu1 %v4978_v37 }
  0xe0   :  { %v365_v46 = vpop.f32.mrb[3].mxu0  ;;  %4980 = vmatprep.subr.bf16.mxu1 %v5186_v25 }
  0xe1   :  { %v4981_v47 = vpack.c.bf16 %v4562_v38, %v365_v46 }
  0xe2   :  { %4586 = vmatmul.mubr.msk.f32.vlgmr.msra.gmra.mrb[0].mxu1 %vm88_vm0, %v5734_v42 }
  0xe3   :  { %v4565_v48 = vpop.f32.mrb[4].mxu0  ;;  %4982 = vmatpush3.bf16.msra.mxu1 %v4981_v47  ;;  %4592 = vmatprep.mubr.msk.f32.mxu1 %vm5187_vm1, %v5188_v49 }
  0xe4   :  { %v375_v51 = vpop.f32.mrb[5].mxu0  ;;  %4983 = vmatprep.subr.bf16.mxu1 %v5186_v25 }
  0xe5   :  { %v4984_v54 = vpack.c.bf16 %v4565_v48, %v375_v51 }
  0xe6   :  { %4593 = vmatmul.mubr.msk.f32.vlgmr.msra.gmra.mrb[2].mxu1 %vm88_vm0, %v5734_v42 }
  0xe7   :  { %v4568_v52 = vpop.f32.mrb[6].mxu0  ;;  %4985 = vmatpush3.bf16.msra.mxu1 %v4984_v54  ;;  %4599 = vmatprep.mubr.msk.f32.mxu1 %vm5187_vm1, %v5188_v49 }
  0xe8   :  { %v385_v58 = vpop.f32.mrb[7].mxu0  ;;  %4986 = vmatprep.subr.bf16.mxu1 %v5186_v25 }
  0xe9   :  { %v4987_v63 = vpack.c.bf16 %v4568_v52, %v385_v58 }
  0xea   :  { %4600 = vmatmul.mubr.msk.f32.vlgmr.msra.gmra.mrb[4].mxu1 %vm88_vm0, %v5734_v42 }
  0xeb   :  { %v4571_v4 = vpop.f32.mrb[8].mxu0  ;;  %4988 = vmatpush3.bf16.msra.mxu1 %v4987_v63  ;;  %4606 = vmatprep.mubr.msk.f32.mxu1 %vm5187_vm1, %v5188_v49 }
  0xec   :  { %v395_v1 = vpop.f32.mrb[9].mxu0  ;;  %4989 = vmatprep.subr.bf16.mxu1 %v5186_v25 }
  0xed   :  { %v4990_v2 = vpack.c.bf16 %v4571_v4, %v395_v1 }
  0xee   :  { %4607 = vmatmul.mubr.msk.f32.vlgmr.msra.gmra.mrb[6].mxu1 %vm88_vm0, %v5734_v42 }
  0xef   :  { %v4574_v45 = vpop.f32.mrb[10].mxu0  ;;  %4991 = vmatpush3.bf16.msra.mxu1 %v4990_v2  ;;  %4613 = vmatprep.mubr.msk.f32.mxu1 %vm5187_vm1, %v5188_v49 }
  0xf0   :  { %v405_v5 = vpop.f32.mrb[11].mxu0  ;;  %4992 = vmatprep.subr.bf16.mxu1 %v5186_v25 }
  0xf1   :  { %v4993_v55 = vpack.c.bf16 %v4574_v45, %v405_v5 }
  0xf2   :  { %4614 = vmatmul.mubr.msk.f32.vlgmr.msra.gmra.mrb[8].mxu1 %vm88_vm0, %v5734_v42 }
  0xf3   :  { %v4577_v9 = vpop.f32.mrb[12].mxu0  ;;  %4994 = vmatpush3.bf16.msra.mxu1 %v4993_v55  ;;  %4620 = vmatprep.mubr.msk.f32.mxu1 %vm5187_vm1, %v5188_v49 }
  0xf4   :  { %v415_v10 = vpop.f32.mrb[13].mxu0  ;;  %4995 = vmatprep.subr.bf16.mxu1 %v5186_v25 }
  0xf5   :  { %v4996_v56 = vpack.c.bf16 %v4577_v9, %v415_v10 }
  0xf6   :  { %4621 = vmatmul.mubr.msk.f32.vlgmr.msra.gmra.mrb[10].mxu1 %vm88_vm0, %v5734_v42 }
  0xf7   :  { %v4580_v6 = vpop.f32.mrb[14].mxu0  ;;  %4997 = vmatpush3.bf16.msra.mxu1 %v4996_v56  ;;  %4627 = vmatprep.mubr.msk.f32.mxu1 %vm5187_vm1, %v5188_v49 }
  0xf8   :  { %v425_v15 = vpop.f32.mrb[15].mxu0  ;;  %4998 = vmatprep.subr.bf16.mxu1 %v5186_v25 }
  0xf9   :  { %v4999_v20 = vpack.c.bf16 %v4580_v6, %v425_v15 }
  0xfa   :  { %4628 = vmatmul.mubr.msk.f32.vlgmr.msra.gmra.mrb[12].mxu1 %vm88_vm0, %v5734_v42 }
  0xfb   :  { %5000 = vmatpush3.bf16.msra.mxu1 %v4999_v20  ;;  %v4643_v24 = vpop.f32.mrb[16].mxu0  ;;  %4634 = vmatprep.mubr.msk.f32.mxu1 %vm5187_vm1, %v5188_v49 }
  0xfc   :  { %v1111_v30 = vpop.f32.mrb[17].mxu0  ;;  %5005 = vmatprep.subr.bf16.mxu1 %v5186_v25 }
  0xfd   :  { %v5006_v32 = vpack.c.bf16 %v4643_v24, %v1111_v30 }
  0xfe   :  { %4635 = vmatmul.mubr.msk.f32.vlgmr.msra.gmra.mrb[14].mxu1 %vm88_vm0, %v5734_v42 }
  0xff   :  { %v4646_v36 = vpop.f32.mrb[18].mxu0  ;;  %5007 = vmatpush3.bf16.msra.mxu1 %v5006_v32  ;;  %4669 = vmatprep.mubr.msk.f32.mxu1 %vm5187_vm1, %v5188_v49 }
 0x100   :  { %v1121_v40 = vpop.f32.mrb[19].mxu0  ;;  %5008 = vmatprep.subr.bf16.mxu1 %v5186_v25 }
 0x101   :  { %v5009_v50 = vpack.c.bf16 %v4646_v36, %v1121_v40 }
 0x102   :  { %4670 = vmatmul.mubr.msk.f32.vlgmr.msra.gmra.mrb[16].mxu1 %vm88_vm0, %v5734_v42 }
 0x103   :  { %v4649_v57 = vpop.f32.mrb[20].mxu0  ;;  %5010 = vmatpush3.bf16.msra.mxu1 %v5009_v50  ;;  %4676 = vmatprep.mubr.msk.f32.mxu1 %vm5187_vm1, %v5188_v49 }
 0x104   :  { %v1131_v8 = vpop.f32.mrb[21].mxu0  ;;  %5011 = vmatprep.subr.bf16.mxu1 %v5186_v25 }
 0x105   :  { %v5012_v12 = vpack.c.bf16 %v4649_v57, %v1131_v8 }
 0x106   :  { %4677 = vmatmul.mubr.msk.f32.vlgmr.msra.gmra.mrb[18].mxu1 %vm88_vm0, %v5734_v42 }
 0x107   :  { %v4652_v33 = vpop.f32.mrb[22].mxu0  ;;  %5013 = vmatpush3.bf16.msra.mxu1 %v5012_v12  ;;  %4683 = vmatprep.mubr.msk.f32.mxu1 %vm5187_vm1, %v5188_v49 }
 0x108   :  { %v1141_v41 = vpop.f32.mrb[23].mxu0  ;;  %5014 = vmatprep.subr.bf16.mxu1 %v5186_v25 }
 0x109   :  { %v5015_v53 = vpack.c.bf16 %v4652_v33, %v1141_v41 }
 0x10a   :  { %4684 = vmatmul.mubr.msk.f32.vlgmr.msra.gmra.mrb[20].mxu1 %vm88_vm0, %v5734_v42 }
 0x10b   :  { %v4655_v62 = vpop.f32.mrb[24].mxu0  ;;  %5016 = vmatpush3.bf16.msra.mxu1 %v5015_v53  ;;  %4690 = vmatprep.mubr.msk.f32.mxu1 %vm5187_vm1, %v5188_v49 }
 0x10c   :  { %v1151_v13 = vpop.f32.mrb[25].mxu0  ;;  %5017 = vmatprep.subr.bf16.mxu1 %v5186_v25 }
 0x10d   :  { %v5018_v11 = vpack.c.bf16 %v4655_v62, %v1151_v13 }
 0x10e   :  { %4691 = vmatmul.mubr.msk.f32.vlgmr.msra.gmra.mrb[22].mxu1 %vm88_vm0, %v5734_v42 }
 0x10f   :  { %v4658_v23 = vpop.f32.mrb[26].mxu0  ;;  %5019 = vmatpush3.bf16.msra.mxu1 %v5018_v11  ;;  %4697 = vmatprep.mubr.msk.f32.mxu1 %vm5187_vm1, %v5188_v49 }
 0x110   :  { %v1161_v7 = vpop.f32.mrb[27].mxu0  ;;  %5020 = vmatprep.subr.bf16.mxu1 %v5186_v25 }
 0x111   :  { %v5021_v3 = vpack.c.bf16 %v4658_v23, %v1161_v7 }
 0x112   :  { %4698 = vmatmul.mubr.msk.f32.vlgmr.msra.gmra.mrb[24].mxu1 %vm88_vm0, %v5734_v42 }
 0x113   :  { %v4661_v16 = vpop.f32.mrb[28].mxu0  ;;  %5022 = vmatpush3.bf16.msra.mxu1 %v5021_v3  ;;  %4704 = vmatprep.mubr.msk.f32.mxu1 %vm5187_vm1, %v5188_v49 }
 0x114   :  { %v1171_v18 = vpop.f32.mrb[29].mxu0  ;;  %5023 = vmatprep.subr.bf16.mxu1 %v5186_v25 }
 0x115   :  { %v5024_v19 = vpack.c.bf16 %v4661_v16, %v1171_v18 }
 0x116   :  { %4705 = vmatmul.mubr.msk.f32.vlgmr.msra.gmra.mrb[26].mxu1 %vm88_vm0, %v5734_v42 }
 0x117   :  { %v4664_v21 = vpop.f32.mrb[30].mxu0  ;;  %5025 = vmatpush3.bf16.msra.mxu1 %v5024_v19  ;;  %4711 = vmatprep.mubr.msk.f32.mxu1 %vm5187_vm1, %v5188_v49 }
 0x118   :  { %v1181_v22 = vpop.f32.mrb[31].mxu0  ;;  %5026 = vmatprep.subr.bf16.mxu1 %v5186_v25 }
 0x119   :  { %v5027_v26 = vpack.c.bf16 %v4664_v21, %v1181_v22 }
 0x11a   :  { %4712 = vmatmul.mubr.msk.f32.vlgmr.msra.gmra.mrb[28].mxu1 %vm88_vm0, %v5734_v42 }
 0x11b   :  { %5028 = vmatpush3.bf16.msra.mxu1 %v5027_v26  ;;  %v4727_v27 = vpop.f32.mrb[32].mxu0  ;;  %4718 = vmatprep.mubr.msk.f32.mxu1 %vm5187_vm1, %v5188_v49 }
 0x11c   :  { %v1864_v34 = vpop.f32.mrb[33].mxu0  ;;  %5033 = vmatprep.subr.bf16.mxu1 %v5186_v25 }
 0x11d   :  { %v5034_v29 = vpack.c.bf16 %v4727_v27, %v1864_v34 }
 0x11e   :  { %4719 = vmatmul.mubr.msk.f32.vlgmr.msra.gmra.mrb[30].mxu1 %vm88_vm0, %v5734_v42 }
 0x11f   :  { %v4730_v35 = vpop.f32.mrb[34].mxu0  ;;  %5035 = vmatpush3.bf16.msra.mxu1 %v5034_v29  ;;  %4753 = vmatprep.mubr.msk.f32.mxu1 %vm5187_vm1, %v5188_v49 }
 0x120   :  { %v1874_v37 = vpop.f32.mrb[35].mxu0  ;;  %5036 = vmatprep.subr.bf16.mxu1 %v5186_v25 }
 0x121   :  { %v5037_v38 = vpack.c.bf16 %v4730_v35, %v1874_v37 }
 0x122   :  { %4754 = vmatmul.mubr.msk.f32.vlgmr.msra.gmra.mrb[32].mxu1 %vm88_vm0, %v5734_v42 }
 0x123   :  { %v4733_v46 = vpop.f32.mrb[36].mxu0  ;;  %5038 = vmatpush3.bf16.msra.mxu1 %v5037_v38  ;;  %4760 = vmatprep.mubr.msk.f32.mxu1 %vm5187_vm1, %v5188_v49 }
 0x124   :  { %v1884_v47 = vpop.f32.mrb[37].mxu0  ;;  %5039 = vmatprep.subr.bf16.mxu1 %v5186_v25 }
 0x125   :  { %v5040_v48 = vpack.c.bf16 %v4733_v46, %v1884_v47 }
 0x126   :  { %4761 = vmatmul.mubr.msk.f32.vlgmr.msra.gmra.mrb[34].mxu1 %vm88_vm0, %v5734_v42 }
 0x127   :  { %v4736_v51 = vpop.f32.mrb[38].mxu0  ;;  %5041 = vmatpush3.bf16.msra.mxu1 %v5040_v48  ;;  %4767 = vmatprep.mubr.msk.f32.mxu1 %vm5187_vm1, %v5188_v49 }
 0x128   :  { %v1894_v54 = vpop.f32.mrb[39].mxu0  ;;  %5042 = vmatprep.subr.bf16.mxu1 %v5186_v25 }
 0x129   :  { %v5043_v52 = vpack.c.bf16 %v4736_v51, %v1894_v54 }
 0x12a   :  { %4768 = vmatmul.mubr.msk.f32.vlgmr.msra.gmra.mrb[36].mxu1 %vm88_vm0, %v5734_v42 }
 0x12b   :  { %v4739_v58 = vpop.f32.mrb[40].mxu0  ;;  %5044 = vmatpush3.bf16.msra.mxu1 %v5043_v52  ;;  %4774 = vmatprep.mubr.msk.f32.mxu1 %vm5187_vm1, %v5188_v49 }
 0x12c   :  { %v1904_v63 = vpop.f32.mrb[41].mxu0  ;;  %5045 = vmatprep.subr.bf16.mxu1 %v5186_v25 }
 0x12d   :  { %v5046_v4 = vpack.c.bf16 %v4739_v58, %v1904_v63 }
 0x12e   :  { %4775 = vmatmul.mubr.msk.f32.vlgmr.msra.gmra.mrb[38].mxu1 %vm88_vm0, %v5734_v42 }
 0x12f   :  { %v4742_v1 = vpop.f32.mrb[42].mxu0  ;;  %5047 = vmatpush3.bf16.msra.mxu1 %v5046_v4  ;;  %4781 = vmatprep.mubr.msk.f32.mxu1 %vm5187_vm1, %v5188_v49 }
 0x130   :  { %v1914_v2 = vpop.f32.mrb[43].mxu0  ;;  %5048 = vmatprep.subr.bf16.mxu1 %v5186_v25 }
 0x131   :  { %v5049_v45 = vpack.c.bf16 %v4742_v1, %v1914_v2 }
 0x132   :  { %4782 = vmatmul.mubr.msk.f32.vlgmr.msra.gmra.mrb[40].mxu1 %vm88_vm0, %v5734_v42 }
 0x133   :  { %v4745_v5 = vpop.f32.mrb[44].mxu0  ;;  %5050 = vmatpush3.bf16.msra.mxu1 %v5049_v45  ;;  %4788 = vmatprep.mubr.msk.f32.mxu1 %vm5187_vm1, %v5188_v49 }
 0x134   :  { %v1924_v55 = vpop.f32.mrb[45].mxu0  ;;  %5051 = vmatprep.subr.bf16.mxu1 %v5186_v25 }
 0x135   :  { %v5052_v9 = vpack.c.bf16 %v4745_v5, %v1924_v55 }
 0x136   :  { %4789 = vmatmul.mubr.msk.f32.vlgmr.msra.gmra.mrb[42].mxu1 %vm88_vm0, %v5734_v42 }
 0x137   :  { %v4748_v10 = vpop.f32.mrb[46].mxu0  ;;  %5053 = vmatpush3.bf16.msra.mxu1 %v5052_v9  ;;  %4795 = vmatprep.mubr.msk.f32.mxu1 %vm5187_vm1, %v5188_v49 }
 0x138   :  { %v1934_v56 = vpop.f32.mrb[47].mxu0  ;;  %5054 = vmatprep.subr.bf16.mxu1 %v5186_v25 }
 0x139   :  { %v5055_v6 = vpack.c.bf16 %v4748_v10, %v1934_v56 }
 0x13a   :  { %4796 = vmatmul.mubr.msk.f32.vlgmr.msra.gmra.mrb[44].mxu1 %vm88_vm0, %v5734_v42 }
 0x13b   :  { %5056 = vmatpush3.bf16.msra.mxu1 %v5055_v6  ;;  %v4811_v15 = vpop.f32.mrb[48].mxu0  ;;  %4802 = vmatprep.mubr.msk.f32.mxu1 %vm5187_vm1, %v5188_v49 }
 0x13c   :  { %v2617_v20 = vpop.f32.mrb[49].mxu0  ;;  %5061 = vmatprep.subr.bf16.mxu1 %v5186_v25 }
 0x13d   :  { %v5062_v24 = vpack.c.bf16 %v4811_v15, %v2617_v20 }
 0x13e   :  { %4803 = vmatmul.mubr.msk.f32.vlgmr.msra.gmra.mrb[46].mxu1 %vm88_vm0, %v5734_v42 }
 0x13f   :  { %v4814_v30 = vpop.f32.mrb[50].mxu0  ;;  %5063 = vmatpush3.bf16.msra.mxu1 %v5062_v24  ;;  %4837 = vmatprep.mubr.msk.f32.mxu1 %vm5187_vm1, %v5188_v49 }
 0x140   :  { %v2627_v32 = vpop.f32.mrb[51].mxu0  ;;  %5064 = vmatprep.subr.bf16.mxu1 %v5186_v25 }
 0x141   :  { %v5065_v36 = vpack.c.bf16 %v4814_v30, %v2627_v32 }
 0x142   :  { %4838 = vmatmul.mubr.msk.f32.vlgmr.msra.gmra.mrb[48].mxu1 %vm88_vm0, %v5734_v42 }
 0x143   :  { %v4817_v40 = vpop.f32.mrb[52].mxu0  ;;  %5066 = vmatpush3.bf16.msra.mxu1 %v5065_v36  ;;  %4844 = vmatprep.mubr.msk.f32.mxu1 %vm5187_vm1, %v5188_v49 }
 0x144   :  { %v2637_v50 = vpop.f32.mrb[53].mxu0  ;;  %5067 = vmatprep.subr.bf16.mxu1 %v5186_v25 }
 0x145   :  { %v5068_v57 = vpack.c.bf16 %v4817_v40, %v2637_v50  ;;  %v82_v50 = vmul.f32 %v5403_v31, %v5403_v31 }
 0x146   :  { %4845 = vmatmul.mubr.msk.f32.vlgmr.msra.gmra.mrb[50].mxu1 %vm88_vm0, %v5734_v42 }
 0x147   :  { %v4820_v8 = vpop.f32.mrb[54].mxu0  ;;  %5069 = vmatpush3.bf16.msra.mxu1 %v5068_v57  ;;  %4851 = vmatprep.mubr.msk.f32.mxu1 %vm5187_vm1, %v5188_v49 }
 0x148   :  { %v2647_v12 = vpop.f32.mrb[55].mxu0  ;;  %5070 = vmatprep.subr.bf16.mxu1 %v5186_v25 }
 0x149   :  { %v5071_v33 = vpack.c.bf16 %v4820_v8, %v2647_v12 }
 0x14a   :  { %4852 = vmatmul.mubr.msk.f32.vlgmr.msra.gmra.mrb[52].mxu1 %vm88_vm0, %v5734_v42 }
 0x14b   :  { %v4823_v41 = vpop.f32.mrb[56].mxu0  ;;  %5072 = vmatpush3.bf16.msra.mxu1 %v5071_v33  ;;  %4858 = vmatprep.mubr.msk.f32.mxu1 %vm5187_vm1, %v5188_v49  ;;  %v68_v33 = vsub.f32 %v5353_v61, %v5437_v59  ;;  %v6143_v59 = vld [vmem:[#allocation8_spill] sm:$0xff] }
 0x14c   :  { %v2657_v53 = vpop.f32.mrb[57].mxu0  ;;  %5073 = vmatprep.subr.bf16.mxu1 %v5186_v25 }
 0x14d   :  { %v5074_v62 = vpack.c.bf16 %v4823_v41, %v2657_v53 }
 0x14e   :  { %4859 = vmatmul.mubr.msk.f32.vlgmr.msra.gmra.mrb[54].mxu1 %vm88_vm0, %v5734_v42 }
 0x14f   :  { %v4826_v13 = vpop.f32.mrb[58].mxu0  ;;  %5075 = vmatpush3.bf16.msra.mxu1 %v5074_v62  ;;  %4865 = vmatprep.mubr.msk.f32.mxu1 %vm5187_vm1, %v5188_v49  ;;  %v69_v62 = vsub.f32 %v5381_v14, %v5442_v60 }
 0x150   :  { %v2667_v11 = vpop.f32.mrb[59].mxu0  ;;  %5076 = vmatprep.subr.bf16.mxu1 %v5186_v25 }
 0x151   :  { %v5077_v23 = vpack.c.bf16 %v4826_v13, %v2667_v11  ;;  %v84_v13 = vmul.f32 %v68_v33, %v68_v33 }
 0x152   :  { %4866 = vmatmul.mubr.msk.f32.vlgmr.msra.gmra.mrb[56].mxu1 %vm88_vm0, %v5734_v42 }
 0x153   :  { %v4829_v7 = vpop.f32.mrb[60].mxu0  ;;  %5078 = vmatpush3.bf16.msra.mxu1 %v5077_v23  ;;  %4872 = vmatprep.mubr.msk.f32.mxu1 %vm5187_vm1, %v5188_v49 }
 0x154   :  { %v2677_v3 = vpop.f32.mrb[61].mxu0  ;;  %5079 = vmatprep.subr.bf16.mxu1 %v5186_v25 }
 0x155   :  { %v5080_v16 = vpack.c.bf16 %v4829_v7, %v2677_v3  ;;  %v112_v7 = vsel %vm88_vm0, %v84_v13, 0.0 }
 0x156   :  { %4873 = vmatmul.mubr.msk.f32.vlgmr.msra.gmra.mrb[58].mxu1 %vm88_vm0, %v5734_v42 }
 0x157   :  { %v4832_v18 = vpop.f32.mrb[62].mxu0  ;;  %5081 = vmatpush3.bf16.msra.mxu1 %v5080_v16  ;;  %4879 = vmatprep.mubr.msk.f32.mxu1 %vm5187_vm1, %v5188_v49  ;;  %v71_v16 = vsub.f32 %v6143_v59, %v5458_v44 }
 0x158   :  { %v2687_v19 = vpop.f32.mrb[63].mxu0  ;;  %5082 = vmatprep.subr.bf16.mxu1 %v5186_v25 }
 0x159   :  { %v5083_v21 = vpack.c.bf16 %v4832_v18, %v2687_v19 }
 0x15a   :  { %4880 = vmatmul.mubr.msk.f32.vlgmr.msra.gmra.mrb[60].mxu1 %vm88_vm0, %v5734_v42 }
 0x15b   :  { %5084 = vmatpush3.bf16.msra.mxu1 %v5083_v21  ;;  %v4895_v22 = vpop.f32.mrb[64].mxu0  ;;  %4886 = vmatprep.mubr.msk.f32.mxu1 %vm5187_vm1, %v5188_v49  ;;  %v87_v21 = vmul.f32 %v71_v16, %v71_v16 }
 0x15c   :  { %v3370_v26 = vpop.f32.mrb[65].mxu0  ;;  %5089 = vmatprep.subr.bf16.mxu1 %v5186_v25 }
 0x15d   :  { %v5090_v27 = vpack.c.bf16 %v4895_v22, %v3370_v26 }
 0x15e   :  { %4887 = vmatmul.mubr.msk.f32.vlgmr.msra.gmra.mrb[62].mxu1 %vm88_vm0, %v5734_v42 }
 0x15f   :  { %v4898_v34 = vpop.f32.mrb[66].mxu0  ;;  %5091 = vmatpush3.bf16.msra.mxu1 %v5090_v27  ;;  %4921 = vmatprep.mubr.msk.f32.mxu1 %vm5187_vm1, %v5188_v49 }
 0x160   :  { %v3380_v29 = vpop.f32.mrb[67].mxu0  ;;  %5092 = vmatprep.subr.bf16.mxu1 %v5186_v25 }
 0x161   :  { %v5093_v35 = vpack.c.bf16 %v4898_v34, %v3380_v29 }
 0x162   :  { %4922 = vmatmul.mubr.msk.f32.vlgmr.msra.gmra.mrb[64].mxu1 %vm88_vm0, %v5734_v42 }
 0x163   :  { %v4901_v37 = vpop.f32.mrb[68].mxu0  ;;  %5094 = vmatpush3.bf16.msra.mxu1 %v5093_v35  ;;  %4928 = vmatprep.mubr.msk.f32.mxu1 %vm5187_vm1, %v5188_v49 }
 0x164   :  { %v3390_v38 = vpop.f32.mrb[69].mxu0  ;;  %5095 = vmatprep.subr.bf16.mxu1 %v5186_v25 }
 0x165   :  { %v5096_v46 = vpack.c.bf16 %v4901_v37, %v3390_v38 }
 0x166   :  { %4929 = vmatmul.mubr.msk.f32.vlgmr.msra.gmra.mrb[66].mxu1 %vm88_vm0, %v5734_v42 }
 0x167   :  { %v4904_v47 = vpop.f32.mrb[70].mxu0  ;;  %5097 = vmatpush3.bf16.msra.mxu1 %v5096_v46  ;;  %4935 = vmatprep.mubr.msk.f32.mxu1 %vm5187_vm1, %v5188_v49 }
 0x168   :  { %v3400_v48 = vpop.f32.mrb[71].mxu0  ;;  %5098 = vmatprep.subr.bf16.mxu1 %v5186_v25 }
 0x169   :  { %v5099_v51 = vpack.c.bf16 %v4904_v47, %v3400_v48 }
 0x16a   :  { %4936 = vmatmul.mubr.msk.f32.vlgmr.msra.gmra.mrb[68].mxu1 %vm88_vm0, %v5734_v42 }
 0x16b   :  { %v4907_v54 = vpop.f32.mrb[72].mxu0  ;;  %5100 = vmatpush3.bf16.msra.mxu1 %v5099_v51  ;;  %4942 = vmatprep.mubr.msk.f32.mxu1 %vm5187_vm1, %v5188_v49 }
 0x16c   :  { %v3410_v52 = vpop.f32.mrb[73].mxu0  ;;  %5101 = vmatprep.subr.bf16.mxu1 %v5186_v25 }
 0x16d   :  { %v5102_v58 = vpack.c.bf16 %v4907_v54, %v3410_v52 }
 0x16e   :  { %4943 = vmatmul.mubr.msk.f32.vlgmr.msra.gmra.mrb[70].mxu1 %vm88_vm0, %v5734_v42 }
 0x16f   :  { %v4910_v63 = vpop.f32.mrb[74].mxu0  ;;  %5103 = vmatpush3.bf16.msra.mxu1 %v5102_v58  ;;  %4949 = vmatprep.mubr.msk.f32.mxu1 %vm5187_vm1, %v5188_v49 }
 0x170   :  { %v3420_v4 = vpop.f32.mrb[75].mxu0  ;;  %5104 = vmatprep.subr.bf16.mxu1 %v5186_v25 }
 0x171   :  { %v5105_v1 = vpack.c.bf16 %v4910_v63, %v3420_v4 }
 0x172   :  { %4950 = vmatmul.mubr.msk.f32.vlgmr.msra.gmra.mrb[72].mxu1 %vm88_vm0, %v5734_v42 }
 0x173   :  { %v4913_v2 = vpop.f32.mrb[76].mxu0  ;;  %5106 = vmatpush3.bf16.msra.mxu1 %v5105_v1  ;;  %4956 = vmatprep.mubr.msk.f32.mxu1 %vm5187_vm1, %v5188_v49 }
 0x174   :  { %v3430_v45 = vpop.f32.mrb[77].mxu0  ;;  %5107 = vmatprep.subr.bf16.mxu1 %v5186_v25 }
 0x175   :  { %v5108_v5 = vpack.c.bf16 %v4913_v2, %v3430_v45 }
 0x176   :  { %4957 = vmatmul.mubr.msk.f32.vlgmr.msra.gmra.mrb[74].mxu1 %vm88_vm0, %v5734_v42 }
 0x177   :  { %v4916_v55 = vpop.f32.mrb[78].mxu0  ;;  %5109 = vmatpush3.bf16.msra.mxu1 %v5108_v5  ;;  %4963 = vmatprep.mubr.msk.f32.mxu1 %vm5187_vm1, %v5188_v49 }
 0x178   :  { %v3440_v9 = vpop.f32.mrb[79].mxu0  ;;  %5110 = vmatprep.subr.bf16.mxu1 %v5186_v25  ;;  %v81_v25 = vmul.f32 %v5401_v28, %v5401_v28  ;;  %v108_v28 = vsel %vm88_vm0, %v82_v50, 0.0 }
 0x179   :  { %v5111_v10 = vpack.c.bf16 %v4916_v55, %v3440_v9 }
 0x17a   :  { %4964 = vmatmul.mubr.msk.f32.vlgmr.msra.gmra.mrb[76].mxu1 %vm88_vm0, %v5734_v42  ;;  %v106_v40 = vsel %vm88_vm0, %v81_v25, 0.0 }
 0x17b   :  { %5112 = vmatpush3.bf16.msra.mxu1 %v5111_v10  ;;  %4970 = vmatprep.mubr.msk.f32.mxu1 %vm5187_vm1, %v5188_v49  ;;  %v107_v8 = vadd.f32 %v106_v40, %v5448_v0  ;;  %v85_v0 = vmul.f32 %v69_v62, %v69_v62 }
 0x17d   :  { %v109_v53 = vadd.f32 %v108_v28, %v107_v8  ;;  %v114_v19 = vsel %vm88_vm0, %v85_v0, 0.0 }
 0x17e   :  { %4971 = vmatmul.mubr.msk.f32.vlgmr.msra.gmra.mrb[78].mxu1 %vm88_vm0, %v5734_v42  ;;  %v83_v42 = vmul.f32 %v5419_v43, %v5419_v43  ;;  %v70_v43 = vsub.f32 %v5387_v17, %v5453_v39  ;;  %v118_v17 = vsel %vm88_vm0, %v87_v21, 0.0 }
 0x180   :  { %v110_v31 = vsel %vm88_vm0, %v83_v42, 0.0  ;;  %v86_v18 = vmul.f32 %v70_v43, %v70_v43 }
 0x181   :  { %v111_v11 = vadd.f32 %v110_v31, %v109_v53 }
 0x182   :  { %v116_v22 = vsel %vm88_vm0, %v86_v18, 0.0 }
 0x183   :  { %v113_v61 = vadd.f32 %v112_v7, %v111_v11 }
 0x185   :  { %v115_v14 = vadd.f32 %v114_v19, %v113_v61 }
 0x187   :  { %v117_v27 = vadd.f32 %v116_v22, %v115_v14 }
 0x189   :  { %v119_v39 = vadd.f32 %v118_v17, %v117_v27 }
 0x18b   :  { %120 = vadd.xlane.f32.xlu0 %v119_v39 }
 0x1b5   :  { %v503_v56 = vpop.f32.mrb[0].mxu1 }
 0x1b6   :  { %v4587_v6 = vpop.f32.mrb[1].mxu1  ;;  %v5955_v29 = vmul.f32 %v503_v56, %v503_v56 }
 0x1b9   :  { %v573_v15 = vpop.f32.mrb[2].mxu1 }
 0x1ba   :  { %v4594_v20 = vpop.f32.mrb[3].mxu1  ;;  %v5965_v47 = vmul.f32 %v573_v15, %v573_v15 }
 0x1bd   :  { %v643_v24 = vpop.f32.mrb[4].mxu1 }
 0x1be   :  { %v4601_v30 = vpop.f32.mrb[5].mxu1  ;;  %v5975_v63 = vmul.f32 %v643_v24, %v643_v24 }
 0x1c1   :  { %v713_v32 = vpop.f32.mrb[6].mxu1 }
 0x1c2   :  { %v4608_v36 = vpop.f32.mrb[7].mxu1  ;;  %v5985_v55 = vmul.f32 %v713_v32, %v713_v32 }
 0x1c5   :  { %v783_v49 = vpop.f32.mrb[8].mxu1 }
 0x1c6   :  { %v4615_v57 = vpop.f32.mrb[9].mxu1  ;;  %v5995_v20 = vmul.f32 %v783_v49, %v783_v49 }
 0x1c9   :  { %v853_v12 = vpop.f32.mrb[10].mxu1 }
 0x1ca   :  { %v4622_v41 = vpop.f32.mrb[11].mxu1 }
 0x1cd   :  { %v923_v23 = vpop.f32.mrb[12].mxu1 }
 0x1ce   :  { %v4629_v3 = vpop.f32.mrb[13].mxu1 }
 0x1d1   :  { %v993_v60 = vpop.f32.mrb[14].mxu1 }
 0x1d2   :  { %v4636_v26 = vpop.f32.mrb[15].mxu1 }
 0x1d5   :  { %v1256_v34 = vpop.f32.mrb[16].mxu1 }
 0x1d6   :  { %v5957_v35 = vmul.f32 %v1256_v34, %v1256_v34  ;;  %v5959_v37 = vmul.f32 %v1256_v34, %v503_v56  ;;  %v4671_v44 = vpop.f32.mrb[17].mxu1 }
 0x1d8   :  { %v5963_v38 = vadd.f32 %v5957_v35, %v5955_v29 }
 0x1d9   :  { %v1326_v46 = vpop.f32.mrb[18].mxu1 }
 0x1da   :  { %v5967_v48 = vmul.f32 %v1326_v46, %v1326_v46  ;;  %v5969_v51 = vmul.f32 %v1326_v46, %v573_v15  ;;  %v4678_v54 = vpop.f32.mrb[19].mxu1 }
 0x1dc   :  { %v5973_v52 = vadd.f32 %v5967_v48, %v5965_v47 }
 0x1dd   :  { %v1396_v58 = vpop.f32.mrb[20].mxu1 }
 0x1de   :  { %v5977_v4 = vmul.f32 %v1396_v58, %v1396_v58  ;;  %v5979_v1 = vmul.f32 %v1396_v58, %v643_v24  ;;  %v4685_v2 = vpop.f32.mrb[21].mxu1 }
 0x1e0   :  { %v5983_v45 = vadd.f32 %v5977_v4, %v5975_v63 }
 0x1e1   :  { %v1466_v5 = vpop.f32.mrb[22].mxu1 }
 0x1e2   :  { %v5987_v9 = vmul.f32 %v1466_v5, %v1466_v5  ;;  %v5989_v10 = vmul.f32 %v1466_v5, %v713_v32  ;;  %v4692_v56 = vpop.f32.mrb[23].mxu1  ;;  %v6005_v32 = vmul.f32 %v853_v12, %v853_v12 }
 0x1e4   :  { %v5993_v6 = vadd.f32 %v5987_v9, %v5985_v55 }
 0x1e5   :  { %v1536_v15 = vpop.f32.mrb[24].mxu1 }
 0x1e6   :  { %v5997_v24 = vmul.f32 %v1536_v15, %v1536_v15  ;;  %v5999_v30 = vmul.f32 %v1536_v15, %v783_v49  ;;  %v4699_v25 = vpop.f32.mrb[25].mxu1  ;;  %v6015_v49 = vmul.f32 %v923_v23, %v923_v23 }
 0x1e8   :  { %v6003_v36 = vadd.f32 %v5997_v24, %v5995_v20 }
 0x1e9   :  { %v1606_v40 = vpop.f32.mrb[26].mxu1 }
 0x1ea   :  { %v6007_v50 = vmul.f32 %v1606_v40, %v1606_v40  ;;  %v6009_v57 = vmul.f32 %v1606_v40, %v853_v12  ;;  %v4706_v42 = vpop.f32.mrb[27].mxu1  ;;  %v6025_v12 = vmul.f32 %v993_v60, %v993_v60 }
 0x1ec   :  { %v6013_v8 = vadd.f32 %v6007_v50, %v6005_v32 }
 0x1ed   :  { %v1676_v33 = vpop.f32.mrb[28].mxu1 }
 0x1ee   :  { %v6017_v28 = vmul.f32 %v1676_v33, %v1676_v33  ;;  %v6019_v41 = vmul.f32 %v1676_v33, %v923_v23  ;;  %v4713_v53 = vpop.f32.mrb[29].mxu1 }
 0x1ef   :  { %v4106_v53 = vadd.f32 0.0001, %v5973_v52 }
 0x1f0   :  { %v6023_v62 = vadd.f32 %v6017_v28, %v6015_v49 }
 0x1f1   :  { %v1746_v13 = vpop.f32.mrb[30].mxu1 }
 0x1f2   :  { %v6027_v31 = vmul.f32 %v1746_v13, %v1746_v13  ;;  %v6029_v11 = vmul.f32 %v1746_v13, %v993_v60  ;;  %v4720_v43 = vpop.f32.mrb[31].mxu1 }
 0x1f4   :  { %v6033_v0 = vadd.f32 %v6027_v31, %v6025_v12 }
 0x1f5   :  { %v2009_v7 = vpop.f32.mrb[32].mxu1 }
 0x1f6   :  { %v4033_v23 = vsub.f32 %v2009_v7, %v5955_v29  ;;  %v4755_v3 = vpop.f32.mrb[33].mxu1 }
 0x1f9   :  { %v2079_v61 = vpop.f32.mrb[34].mxu1 }
 0x1fa   :  { %v4034_v59 = vsub.f32 %v2079_v61, %v5965_v47  ;;  %v4762_v16 = vpop.f32.mrb[35].mxu1 }
 0x1fd   :  { %v2149_v18 = vpop.f32.mrb[36].mxu1 }
 0x1fe   :  { %v4035_v19 = vsub.f32 %v2149_v18, %v5975_v63  ;;  %v4769_v14 = vpop.f32.mrb[37].mxu1 }
 0x201   :  { %v2219_v21 = vpop.f32.mrb[38].mxu1 }
 0x202   :  { %v4036_v60 = vsub.f32 %v2219_v21, %v5985_v55  ;;  %v4776_v22 = vpop.f32.mrb[39].mxu1 }
 0x205   :  { %v2289_v26 = vpop.f32.mrb[40].mxu1 }
 0x206   :  { %v4037_v27 = vsub.f32 %v2289_v26, %v5995_v20  ;;  %v4783_v17 = vpop.f32.mrb[41].mxu1  ;;  %v4105_v20 = vadd.f32 0.0001, %v5963_v38 }
 0x209   :  { %v2359_v39 = vpop.f32.mrb[42].mxu1 }
 0x20a   :  { %v4038_v34 = vsub.f32 %v2359_v39, %v6005_v32  ;;  %v4790_v29 = vpop.f32.mrb[43].mxu1 }
 0x20d   :  { %v2429_v44 = vpop.f32.mrb[44].mxu1 }
 0x20e   :  { %v4039_v46 = vsub.f32 %v2429_v44, %v6015_v49  ;;  %v4797_v47 = vpop.f32.mrb[45].mxu1 }
 0x211   :  { %v2499_v54 = vpop.f32.mrb[46].mxu1 }
 0x212   :  { %v4040_v58 = vsub.f32 %v2499_v54, %v6025_v12  ;;  %v4804_v63 = vpop.f32.mrb[47].mxu1 }
 0x215   :  { %v2762_v2 = vpop.f32.mrb[48].mxu1 }
 0x216   :  { %v4041_v5 = vsub.f32 %v2762_v2, %v5957_v35  ;;  %v4839_v55 = vpop.f32.mrb[49].mxu1 }
 0x218   :  { %v4113_v56 = vadd.f32 %v4041_v5, %v4033_v23  ;;  %v4107_v23 = vadd.f32 0.0001, %v5983_v45  ;;  %v4111_v5 = vadd.f32 0.0001, %v6023_v62 }
 0x219   :  { %v2832_v15 = vpop.f32.mrb[50].mxu1 }
 0x21a   :  { %v4121_v25 = vadd.f32 0.0009, %v4113_v56  ;;  %v4042_v40 = vsub.f32 %v2832_v15, %v5967_v48  ;;  %v4846_v32 = vpop.f32.mrb[51].mxu1 }
 0x21c   :  { %v4129_v42 = vmul.f32 %v4121_v25, %v4105_v20  ;;  %v4114_v33 = vadd.f32 %v4042_v40, %v4034_v59  ;;  %v4108_v59 = vadd.f32 0.0001, %v5993_v6  ;;  %v4153_v40 = vlaneseq }
 0x21d   :  { %v2902_v49 = vpop.f32.mrb[52].mxu1 }
 0x21e   :  { %v4122_v13 = vadd.f32 0.0009, %v4114_v33  ;;  %v4043_v12 = vsub.f32 %v2902_v49, %v5977_v4  ;;  %v4853_v43 = vpop.f32.mrb[53].mxu1  ;;  %5122 = vrcp.f32 %v4129_v42  ;;  %v4058_v42 = vmul.f32 2.0, %v5969_v51 }
 0x21f   :  { %v4059_v43 = vmul.f32 2.0, %v5979_v1 }
 0x220   :  { %v4130_v7 = vmul.f32 %v4122_v13, %v4106_v53  ;;  %v4115_v35 = vadd.f32 %v4043_v12, %v4035_v19  ;;  %v4109_v19 = vadd.f32 0.0001, %v6003_v36  ;;  %v6069_v13 = vand.u32 127, %v4153_v40 }
 0x221   :  { %v2972_v3 = vpop.f32.mrb[54].mxu1 }
 0x222   :  { %v4123_v61 = vadd.f32 0.0009, %v4115_v35  ;;  %v4044_v38 = vsub.f32 %v2972_v3, %v5987_v9  ;;  %v4860_v16 = vpop.f32.mrb[55].mxu1  ;;  %5124 = vrcp.f32 %v4130_v7  ;;  %v4066_v35 = vadd.f32 0.0001, %v4058_v42 }
 0x223   :  { %vm4155_vm2 = vcmp.lt.s32.totalorder %v6069_v13, 6 }
 0x224   :  { %v4131_v48 = vmul.f32 %v4123_v61, %v4107_v23  ;;  %v4116_v18 = vadd.f32 %v4044_v38, %v4036_v60  ;;  %v4110_v60 = vadd.f32 0.0001, %v6013_v8  ;;  %v4057_v8 = vmul.f32 2.0, %v5959_v37 }
 0x225   :  { %v3042_v14 = vpop.f32.mrb[56].mxu1 }
 0x226   :  { %v4124_v21 = vadd.f32 0.0009, %v4116_v18  ;;  %v4045_v52 = vsub.f32 %v3042_v14, %v5997_v24  ;;  %v4867_v22 = vpop.f32.mrb[57].mxu1  ;;  %v4065_v33 = vadd.f32 0.0001, %v4057_v8  ;;  %5126 = vrcp.f32 %v4131_v48 }
 0x227   :  { %v4067_v18 = vadd.f32 0.0001, %v4059_v43  ;;  %v4060_v14 = vmul.f32 2.0, %v5989_v10 }
 0x228   :  { %v4132_v4 = vmul.f32 %v4124_v21, %v4108_v59  ;;  %v4117_v26 = vadd.f32 %v4045_v52, %v4037_v27 }
 0x229   :  { %v3112_v17 = vpop.f32.mrb[58].mxu1 }
 0x22a   :  { %v4125_v39 = vadd.f32 0.0009, %v4117_v26  ;;  %v4046_v45 = vsub.f32 %v3112_v17, %v6007_v50  ;;  %v4874_v29 = vpop.f32.mrb[59].mxu1  ;;  %5128 = vrcp.f32 %v4132_v4 }
 0x22b   :  { %v4061_v29 = vmul.f32 2.0, %v5999_v30 }
 0x22c   :  { %v4133_v9 = vmul.f32 %v4125_v39, %v4109_v19  ;;  %v4118_v44 = vadd.f32 %v4046_v45, %v4038_v34  ;;  %v4068_v45 = vadd.f32 0.0001, %v4060_v14 }
 0x22d   :  { %v3182_v47 = vpop.f32.mrb[60].mxu1 }
 0x22e   :  { %v4126_v54 = vadd.f32 0.0009, %v4118_v44  ;;  %v4047_v6 = vsub.f32 %v3182_v47, %v6017_v28  ;;  %v4881_v63 = vpop.f32.mrb[61].mxu1  ;;  %v4112_v28 = vadd.f32 0.0001, %v6033_v0  ;;  %5130 = vrcp.f32 %v4133_v9 }
 0x230   :  { %v6056_v24 = vmul.f32 %v4126_v54, %v4110_v60  ;;  %v4119_v2 = vadd.f32 %v4047_v6, %v4039_v46 }
 0x231   :  { %v3252_v27 = vpop.f32.mrb[62].mxu1 }
 0x232   :  { %v4127_v36 = vadd.f32 0.0009, %v4119_v2  ;;  %v4048_v55 = vsub.f32 %v3252_v27, %v6027_v31  ;;  %v4888_v50 = vpop.f32.mrb[63].mxu1  ;;  %5132 = vrcp.f32 %v6056_v24 }
 0x233   :  { %v4062_v50 = vmul.f32 2.0, %v6009_v57 }
 0x234   :  { %v6060_v56 = vmul.f32 %v4127_v36, %v4111_v5  ;;  %v4120_v34 = vadd.f32 %v4048_v55, %v4040_v58  ;;  %v4069_v55 = vadd.f32 0.0001, %v4061_v29 }
 0x235   :  { %v3515_v15 = vpop.f32.mrb[64].mxu1 }
 0x236   :  { %v4128_v20 = vadd.f32 0.0009, %v4120_v34  ;;  %v4049_v25 = vsub.f32 %v3515_v15, %v5959_v37  ;;  %v4923_v46 = vpop.f32.mrb[65].mxu1  ;;  %v5123_v37 = vpop.eup %5122  ;;  %5134 = vrcp.f32 %v6060_v56 }
 0x237   :  { %v5125_v48 = vpop.eup %5124 }
 0x238   :  { %v6065_v62 = vmul.f32 %v4128_v20, %v4112_v28  ;;  %v4073_v32 = vmul.f32 2.0, %v4049_v25  ;;  %v5127_v39 = vpop.eup %5126 }
 0x239   :  { %v3585_v31 = vpop.f32.mrb[66].mxu1  ;;  %v5129_v36 = vpop.eup %5128 }
 0x23a   :  { %v4081_v49 = vadd.f32 0.0009, %v4073_v32  ;;  %v4050_v58 = vsub.f32 %v3585_v31, %v5969_v51  ;;  %v4930_v53 = vpop.f32.mrb[67].mxu1  ;;  %v5131_v32 = vpop.eup %5130  ;;  %v4070_v31 = vadd.f32 0.0001, %v4062_v50  ;;  %5136 = vrcp.f32 %v6065_v62 }
 0x23c   :  { %v4089_v0 = vmul.f32 %v4081_v49, %v4065_v33  ;;  %v4074_v12 = vmul.f32 2.0, %v4050_v58  ;;  %v4063_v33 = vmul.f32 2.0, %v6019_v41 }
 0x23d   :  { %v3655_v7 = vpop.f32.mrb[68].mxu1 }
 0x23e   :  { %v4145_v3 = vmul.f32 %v5123_v37, %v4089_v0  ;;  %v4082_v23 = vadd.f32 0.0009, %v4074_v12  ;;  %v4051_v61 = vsub.f32 %v3655_v7, %v5979_v1  ;;  %v4937_v38 = vpop.f32.mrb[69].mxu1  ;;  %v5133_v7 = vpop.eup %5132 }
 0x240   :  { %v4090_v51 = vmul.f32 %v4082_v23, %v4066_v35  ;;  %v4075_v16 = vmul.f32 2.0, %v4051_v61  ;;  %v4156_v21 = vsel %vm4155_vm2, %v4145_v3, 0.0  ;;  %v4071_v35 = vadd.f32 0.0001, %v4063_v33 }
 0x241   :  { %v3725_v59 = vpop.f32.mrb[70].mxu1  ;;  %v4165_v44 = vsel %vm4164_vm3, %v4156_v21, 0.0  ;;  %v4064_v3 = vmul.f32 2.0, %v6029_v11 }
 0x242   :  { %v4146_v52 = vmul.f32 %v5125_v48, %v4090_v51  ;;  %v4083_v22 = vadd.f32 0.0009, %v4075_v16  ;;  %v4052_v26 = vsub.f32 %v3725_v59, %v5989_v10  ;;  %v4944_v1 = vpop.f32.mrb[71].mxu1  ;;  %v5135_v59 = vpop.eup %5134 }
 0x244   :  { %v4157_v4 = vsel %vm4155_vm2, %v4146_v52, 0.0  ;;  %v4091_v17 = vmul.f32 %v4083_v22, %v4067_v18  ;;  %v4076_v19 = vmul.f32 2.0, %v4052_v26  ;;  %v4072_v52 = vadd.f32 0.0001, %v4064_v3 }
 0x245   :  { %v4166_v47 = vsel %vm4164_vm3, %v4157_v4, 0.0  ;;  %v3795_v60 = vpop.f32.mrb[72].mxu1 }
 0x246   :  { %v4167_v54 = vadd.f32 %v4166_v47, %v4165_v44  ;;  %v4147_v6 = vmul.f32 %v5127_v39, %v4091_v17  ;;  %v4084_v63 = vadd.f32 0.0009, %v4076_v19  ;;  %v4053_v10 = vsub.f32 %v3795_v60, %v5999_v30  ;;  %v4951_v9 = vpop.f32.mrb[73].mxu1  ;;  %v5137_v19 = vpop.eup %5136 }
 0x247   :  { %v121_v60 = vpop.xlane.xlu0 %120 }
 0x248   :  { %v4158_v2 = vsel %vm4155_vm2, %v4147_v6, 0.0  ;;  %v4092_v27 = vmul.f32 %v4084_v63, %v4068_v45  ;;  %v4077_v5 = vmul.f32 2.0, %v4053_v10 }
 0x249   :  { %v4168_v34 = vsel %vm4164_vm3, %v4158_v2, 0.0  ;;  %v3865_v15 = vpop.f32.mrb[74].mxu1 }
 0x24a   :  { %v4169_v8 = vadd.f32 %v4168_v34, %v4167_v54  ;;  %v4148_v28 = vmul.f32 %v5129_v36, %v4092_v27  ;;  %v4085_v20 = vadd.f32 0.0009, %v4077_v5  ;;  %v4054_v30 = vsub.f32 %v3865_v15, %v6009_v57  ;;  %v4958_v25 = vpop.f32.mrb[75].mxu1 }
 0x24b   :  { %v122_v54 = vrot.slane %v121_v60, 4 }
 0x24c   :  { %v4159_v24 = vsel %vm4155_vm2, %v4148_v28, 0.0  ;;  %v4093_v46 = vmul.f32 %v4085_v20, %v4069_v55  ;;  %v4078_v40 = vmul.f32 2.0, %v4054_v30 }
 0x24d   :  { %v4170_v42 = vsel %vm4164_vm3, %v4159_v24, 0.0  ;;  %v3935_v49 = vpop.f32.mrb[76].mxu1  ;;  %v123_v6 = vadd.f32 %v122_v54, %v121_v60 }
 0x24e   :  { %v4149_v58 = vmul.f32 %v5131_v32, %v4093_v46  ;;  %v4086_v53 = vadd.f32 0.0009, %v4078_v40  ;;  %v4055_v0 = vsub.f32 %v3935_v49, %v6019_v41  ;;  %v4965_v57 = vpop.f32.mrb[77].mxu1  ;;  %v4171_v12 = vadd.f32 %v4170_v42, %v4169_v8 }
 0x24f   :  { %v124_v63 = vrot.slane %v123_v6, 2 }
 0x250   :  { %v4160_v56 = vsel %vm4155_vm2, %v4149_v58, 0.0  ;;  %v4094_v37 = vmul.f32 %v4086_v53, %v4070_v31  ;;  %v4079_v43 = vmul.f32 2.0, %v4055_v0 }
 0x251   :  { %v4005_v23 = vpop.f32.mrb[78].mxu1  ;;  %v4172_v61 = vsel %vm4164_vm3, %v4160_v56, 0.0  ;;  %v125_v10 = vadd.f32 %v124_v63, %v123_v6 }
 0x252   :  { %v4150_v38 = vmul.f32 %v5133_v7, %v4094_v37  ;;  %v4087_v51 = vadd.f32 0.0009, %v4079_v43  ;;  %v4056_v41 = vsub.f32 %v4005_v23, %v6029_v11  ;;  %v4972_v16 = vpop.f32.mrb[79].mxu1  ;;  %v4173_v48 = vadd.f32 %v4172_v61, %v4171_v12 }
 0x253   :  { %v126_v9 = vrot.slane %v125_v10, 1 }
 0x254   :  { %v4095_v18 = vmul.f32 %v4087_v51, %v4071_v35  ;;  %v4080_v62 = vmul.f32 2.0, %v4056_v41  ;;  %v4161_v14 = vsel %vm4155_vm2, %v4150_v38, 0.0 }
 0x255   :  { %v4174_v21 = vsel %vm4164_vm3, %v4161_v14, 0.0  ;;  %v127_v2 = vadd.f32 %v126_v9, %v125_v10 }
 0x256   :  { %v4151_v22 = vmul.f32 %v5135_v59, %v4095_v18  ;;  %v4088_v26 = vadd.f32 0.0009, %v4080_v62  ;;  %v4175_v1 = vadd.f32 %v4174_v21, %v4173_v48 }
 0x257   :  { %5113 = vpush %v127_v2 }
 0x258   :  { %v4096_v4 = vmul.f32 %v4088_v26, %v4072_v52  ;;  %v4162_v17 = vsel %vm4155_vm2, %v4151_v22, 0.0 }
 0x259   :  { %v4176_v11 = vsel %vm4164_vm3, %v4162_v17, 0.0 }
 0x25a   :  { %v4152_v39 = vmul.f32 %v5137_v19, %v4096_v4  ;;  %v4177_v45 = vadd.f32 %v4176_v11, %v4175_v1 }
 0x25c   :  { %v4163_v29 = vsel %vm4155_vm2, %v4152_v39, 0.0 }
 0x25d   :  { %v4178_v44 = vsel %vm4164_vm3, %v4163_v29, 0.0 }
 0x25e   :  { %v4179_v47 = vadd.f32 %v4178_v44, %v4177_v45 }
 0x260   :  { %4180 = vadd.xlane.f32.xlu0 %v4179_v47 }
 0x288   :  { %s5114_s2 = spop %5113 }
 0x289   :  { %v4189_v27 = vstv %s5114_s2 }
 0x28a   :  { %4191 = vst [vmem:[#allocation2] sm:$0xff] %v4189_v27 }
 0x28b   :  { %5149 = shalt.err (!%p5146_p4)
}
 0x28c   :  { %s5150_s13 = scalar_lea.hbm %s6139_s4, 128 }
 0x28d   :  { %p5151_p5 = scmp.ne.s32.totalorder %s6139_s4, %s5150_s13  ;;  %p5154_p6 = scmp.lt.u32.totalorder %s5150_s13, %s6139_s4 }
 0x28f   :  { %p5156_p7 = pnand %p5154_p6, %p5151_p5 }
 0x291   :  { %5159 = shalt.err (!%p5156_p7)
}
 0x292   :  { %4204 = dma.vmem_to_hbm [thread:$0]  %s4202_s9, 128, %s6139_s4, [#allocation3]  }
 0x293   :  { %s5190_s20 = smov [#allocation4]  }
 0x294   :  { %s4211_s21 = sshll.u32 %s5190_s20, 4  ;;  %s4212_s21 = int_to_ptr.vmem [resolvable:$true] %s4211_s21 }
 0x295   :  { %s5160_s23 = scalar_lea.vmem %s4212_s21, 128  ;;  %p5165_p9 = scmp.lt.s32.totalorder %s4212_s21, %s4212_s21 }
 0x296   :  { %p5161_p8 = scmp.ne.s32.totalorder %s4212_s21, %s5160_s23  ;;  %p5166_p10 = scmp.lt.s32.totalorder %s5160_s23, %s5160_s23 }
 0x298   :  { %p5167_p11 = por %p5166_p10, %p5165_p9 }
 0x29a   :  { %p5168_p12 = pnand %p5167_p11, %p5161_p8 }
 0x2ed   :  { %v4181_v13 = vpop.xlane.xlu0 %4180 }
 0x2ee   :  { %v4182_v5 = vrot.slane %v4181_v13, 4 }
 0x2f0   :  { %v4183_v36 = vadd.f32 %v4182_v5, %v4181_v13 }
 0x2f2   :  { %v4184_v55 = vrot.slane %v4183_v36, 2 }
 0x2f4   :  { %v4185_v50 = vadd.f32 %v4184_v55, %v4183_v36 }
 0x2f6   :  { %v4186_v34 = vrot.slane %v4185_v50, 1 }
 0x2f8   :  { %v4187_v15 = vadd.f32 %v4186_v34, %v4185_v50 }
 0x2fa   :  { %5115 = vpush %v4187_v15 }
 0x32b   :  { %s5116_s22 = spop %5115 }
 0x32c   :  { %v4192_v8 = vstv %s5116_s22 }
 0x32d   :  { %4194 = vst [vmem:[#allocation4] sm:$0xff] %v4192_v8 }
 0x32e   :  { %5171 = shalt.err (!%p5168_p12)
}
 0x32f   :  { %s5172_s25 = scalar_lea.hbm %s6140_s5, 128 }
 0x330   :  { %p5173_p13 = scmp.ne.s32.totalorder %s6140_s5, %s5172_s25  ;;  %p5176_p0 = scmp.lt.u32.totalorder %s5172_s25, %s6140_s5 }
 0x332   :  { %p5178_p1 = pnand %p5176_p0, %p5173_p13 }
 0x334   :  { %5181 = shalt.err (!%p5178_p1)
}
 0x335   :  { %4214 = dma.vmem_to_hbm [thread:$0]  %s4212_s21, 128, %s6140_s5, [#allocation5]  }
 0x336   :  { %5182 = dma.done.wait [#allocation3], 128  }
 0x337   :  { %5183 = vsyncadd [#allocation3], 4294967168 }
 0x338   :  { %5184 = dma.done.wait [#allocation5], 128  }
 0x339   :  { %5185 = vsyncadd [#allocation5], 4294967168 }
 0x33a   :  { %4221 = vsyncpa [#allocation3], 1 }
 0x33b   :  { %4222 = vsyncpa [#allocation5], 1 }

</bundles_post_ra>
